<compile_context>
chip_gen: v6e
topology: v6e:2x2x1
jax: 0.10.0
libtpu: 0.0.40
codegen_flags: <defaults>
</compile_context>

<pallas_src>
import functools

import jax
import jax.numpy as jnp
from jax import lax
from jax.experimental import pallas as pl
from jax.experimental.pallas import tpu as pltpu


def _elu(y):
    # TODO(synk): switch to jnp.expm1 once confirmed in the Mosaic elementwise
    # set; exp(y)-1 is the same function (minor precision loss only for y ~ 0-).
    return jnp.where(y > 0.0, y, jnp.exp(y) - 1.0)


# ----------------------------------------------------------------------------
# Single fused kernel: comp embeddings + tree traversal + regression + predict
# ----------------------------------------------------------------------------
def _fused_forward_kernel(*refs, n_comp_layers, num_nodes, B, C, L, E, LOOPF,
                          MAX_CH, MAX_CP):
    it = iter(refs)
    # --- scalar tables (SMEM, 1-D int32; flattened to avoid 2-D SMEM padding) -
    child_flat = next(it)      # (num_nodes * MAX_CH,)
    nchild = next(it)          # (num_nodes,)
    comp_flat = next(it)       # (num_nodes * MAX_CP,)
    ncomp = next(it)           # (num_nodes,)
    loop_idx = next(it)        # (num_nodes,)
    # --- tensors / weights (VMEM, whole-array resident) ----------------------
    comps_ref = next(it)       # (B, C, F)
    loops_ref = next(it)       # (B, L, LOOPF)
    comp_wb = [(next(it), next(it)) for _ in range(n_comp_layers)]
    wih_c_ref, whh_c_ref, b_c_ref = next(it), next(it), next(it)
    wih_n_ref, whh_n_ref, b_n_ref = next(it), next(it), next(it)
    no_nodes_ref, no_comps_ref = next(it), next(it)
    wc1_ref, bc1_ref, wc2_ref, bc2_ref = next(it), next(it), next(it), next(it)
    wr1_ref, br1_ref, wr2_ref, br2_ref = next(it), next(it), next(it), next(it)
    wp_ref, bp_ref = next(it), next(it)
    # --- output & scratch -----------------------------------------------------
    out_ref = next(it)                   # (B, 1)
    comps_proj_scr = next(it)            # (C, B, 4E)  comps-LSTM gate projections
    loops_scr = next(it)                 # (L, B, LOOPF)
    node_proj_scr = next(it)             # (num_nodes, B, 4E) node gate projections
    y_scr = next(it)                     # (B, E) last (root) concat-MLP output

    H4 = 4 * E

    # 1) computation-embedding MLP + comps-LSTM input projection, hoisted out of
    #    the recurrence.  The C axis of comps_tensor is indexed in-kernel (no
    #    host-side transpose); weights are loaded once outside the loop.
    comp_w = [(w_ref[...], b_ref[...]) for (w_ref, b_ref) in comp_wb]
    wih_c = wih_c_ref[...]
    b_c = b_c_ref[...]
    # TODO(synk): at production C/B, batch all computations into one (C*B, F)
    # matmul chain instead of this per-computation loop.
    for ci in range(C):
        y = comps_ref[:, ci, :]                                  # (B, F)
        for w, b in comp_w:
            y = _elu(jnp.dot(y, w, preferred_element_type=jnp.float32) + b)
        comps_proj_scr[ci] = (
            jnp.dot(y, wih_c, preferred_element_type=jnp.float32) + b_c)

    # 2) loop features re-laid out as (L, B, LOOPF) so the node loop can gather
    #    them with a single dynamic leading-axis index.
    for li in range(L):
        loops_scr[li] = loops_ref[:, li, :]

    # 3) loop-invariant values hoisted out of the node loop.
    whh_n = whh_n_ref[...]
    whh_c = whh_c_ref[...]
    wih_n = wih_n_ref[...]
    b_n = b_n_ref[...]
    no_nodes = jnp.broadcast_to(no_nodes_ref[...], (B, E))
    no_comps = jnp.broadcast_to(no_comps_ref[...], (B, E))
    wc1_nodes = wc1_ref[0:E, :]            # concat layer-1 weight, split row-wise
    wc1_comps = wc1_ref[E:2 * E, :]
    wc1_loops = wc1_ref[2 * E:2 * E + LOOPF, :]
    bc1 = bc1_ref[...]
    wc2 = wc2_ref[...]
    bc2 = bc2_ref[...]

    # Padded child-table entries point at slot 0; zero only that slot so masked
    # padded timesteps never read uninitialised VMEM (reads of slot 0 are always
    # either masked out or see a fully written projection).
    node_proj_scr[0] = jnp.zeros((B, H4), jnp.float32)

    def lstm_last_h(gather, whh, count, max_t, empty_h):
        # h/c stay in vregs across the short, statically unrolled time loop
        # (max_t <= 4 here; use a dynamic-trip fori_loop for larger max_t).
        h = jnp.zeros((B, E), jnp.float32)
        c = jnp.zeros((B, E), jnp.float32)
        for t in range(max_t):
            gates = gather(t) + jnp.dot(h, whh,
                                        preferred_element_type=jnp.float32)
            # TODO(synk): if the bundle dump shows relayouts from these E-lane
            # slices, compute activations on the full (B, 4E) vreg and align
            # i/f/g/o with pltpu.roll (idle XLU slot) instead.
            i = jax.nn.sigmoid(gates[:, 0:E])
            f = jax.nn.sigmoid(gates[:, E:2 * E])
            g = jnp.tanh(gates[:, 2 * E:3 * E])
            o = jax.nn.sigmoid(gates[:, 3 * E:4 * E])
            c_new = f * c + i * g
            h_new = o * jnp.tanh(c_new)
            valid = count > t                    # mask padded timesteps
            h = jnp.where(valid, h_new, h)
            c = jnp.where(valid, c_new, c)
        return jnp.where(count > 0, h, empty_h)

    # 4) whole tree traversal in ONE in-kernel loop (children-first, root last):
    #    no per-node grid-step overhead, no extra kernel launches.
    def node_body(n, carry):
        # nodes-LSTM over already-computed child gate projections.
        nodes_h = lstm_last_h(
            lambda t: node_proj_scr[child_flat[n * MAX_CH + t]],
            whh_n, nchild[n], MAX_CH, no_nodes)
        # comps-LSTM over this node's selected computation projections.
        comps_h = lstm_last_h(
            lambda t: comps_proj_scr[comp_flat[n * MAX_CP + t]],
            whh_c, ncomp[n], MAX_CP, no_comps)
        lf = loops_scr[loop_idx[n]]                              # (B, LOOPF)

        # concat MLP: layer-1 weight applied split row-wise (== concat + matmul).
        y = (jnp.dot(nodes_h, wc1_nodes, preferred_element_type=jnp.float32)
             + jnp.dot(comps_h, wc1_comps, preferred_element_type=jnp.float32)
             + jnp.dot(lf, wc1_loops, preferred_element_type=jnp.float32)
             + bc1)
        y = _elu(y)
        y = _elu(jnp.dot(y, wc2, preferred_element_type=jnp.float32) + bc2)

        # Store this node's (hoisted) nodes-LSTM input projection for its parent.
        node_proj_scr[n] = (
            jnp.dot(y, wih_n, preferred_element_type=jnp.float32) + b_n)
        y_scr[...] = y     # last write (root, topological order) survives
        return carry

    lax.fori_loop(0, num_nodes, node_body, 0)

    # 5) regression head + predict + ELU on the root embedding.
    r = y_scr[...]
    r = _elu(jnp.dot(r, wr1_ref[...], preferred_element_type=jnp.float32)
             + br1_ref[...])
    r = _elu(jnp.dot(r, wr2_ref[...], preferred_element_type=jnp.float32)
             + br2_ref[...])
    out_ref[...] = _elu(
        jnp.dot(r, wp_ref[...], preferred_element_type=jnp.float32) + bp_ref[...])


def forward(node_tables, comps_tensor, loops_tensor, params):
    child_tbl, nchild, comp_tbl, ncomp, loop_idx = node_tables
    B, C, F = comps_tensor.shape
    L, LOOPF = loops_tensor.shape[1], loops_tensor.shape[2]
    E = params["no_nodes"].shape[1]
    num_nodes, MAX_CH = child_tbl.shape
    MAX_CP = comp_tbl.shape[1]

    wih_c, whh_c, b_c = params["comps_lstm"]
    wih_n, whh_n, b_n = params["nodes_lstm"]
    (wc1, bc1), (wc2, bc2) = params["concat"]
    (wr1, br1), (wr2, br2) = params["reg"]
    wp, bp = params["predict"]

    comp_flat_wb = []
    for w, b in params["comp"]:
        comp_flat_wb += [w, b]

    scalar_inputs = [child_tbl.reshape(-1), nchild, comp_tbl.reshape(-1),
                     ncomp, loop_idx]
    tensor_inputs = ([comps_tensor, loops_tensor] + comp_flat_wb
                     + [wih_c, whh_c, b_c, wih_n, whh_n, b_n,
                        params["no_nodes"], params["no_comps"],
                        wc1, bc1, wc2, bc2, wr1, br1, wr2, br2, wp, bp])

    smem = pl.BlockSpec(memory_space=pltpu.MemorySpace.SMEM)
    vmem = pl.BlockSpec(memory_space=pltpu.MemorySpace.VMEM)
    in_specs = [smem] * len(scalar_inputs) + [vmem] * len(tensor_inputs)

    kernel = functools.partial(
        _fused_forward_kernel,
        n_comp_layers=len(params["comp"]), num_nodes=num_nodes,
        B=B, C=C, L=L, E=E, LOOPF=LOOPF, MAX_CH=MAX_CH, MAX_CP=MAX_CP)

    out = pl.pallas_call(
        kernel,
        out_shape=jax.ShapeDtypeStruct((B, 1), jnp.float32),
        in_specs=in_specs,
        out_specs=vmem,
        scratch_shapes=[
            pltpu.VMEM((C, B, 4 * E), jnp.float32),       # comps projections
            pltpu.VMEM((L, B, LOOPF), jnp.float32),       # loop features (L-major)
            # TODO(synk): spill to HBM + manual double-buffered DMA for
            # production-size trees (v7x: 64 MiB VMEM).
            pltpu.VMEM((num_nodes, B, 4 * E), jnp.float32),
            pltpu.VMEM((B, E), jnp.float32),              # root embedding
        ],
    )(*scalar_inputs, *tensor_inputs)
    return out[:, 0]


# ----------------------------------------------------------------------------
# Host-side: parameters, tree flattening, pure-JAX reference
# ----------------------------------------------------------------------------
def init_params(key, input_size, comp_embed_layer_sizes, output_size=1):
    E = comp_embed_layer_sizes[-1]
    regression_sizes = [E] + list(comp_embed_layer_sizes[-2:])
    concat_sizes = [E * 2 + 20] + list(comp_embed_layer_sizes[-2:])
    comp_sizes = [input_size] + list(comp_embed_layer_sizes)
    keys = iter(jax.random.split(key, 32))

    def lin(fan_in, fan_out):
        k1, k2 = jax.random.split(next(keys))
        w = jax.random.normal(k1, (fan_in, fan_out), jnp.float32) * 0.1
        b = jax.random.normal(k2, (1, fan_out), jnp.float32) * 0.1
        return w, b

    def lstm_p(in_dim, hid):
        k1, k2, k3 = jax.random.split(next(keys), 3)
        wih = jax.random.normal(k1, (in_dim, 4 * hid), jnp.float32) * 0.1
        whh = jax.random.normal(k2, (hid, 4 * hid), jnp.float32) * 0.1
        b = jax.random.normal(k3, (1, 4 * hid), jnp.float32) * 0.1   # b_ih + b_hh
        return wih, whh, b

    return {
        "comp": [lin(comp_sizes[i], comp_sizes[i + 1])
                 for i in range(len(comp_sizes) - 1)],
        "reg": [lin(regression_sizes[i], regression_sizes[i + 1])
                for i in range(len(regression_sizes) - 1)],
        "concat": [lin(concat_sizes[i], concat_sizes[i + 1])
                   for i in range(len(concat_sizes) - 1)],
        "predict": lin(regression_sizes[-1], output_size),
        "no_comps": jax.random.normal(next(keys), (1, E), jnp.float32) * 0.1,
        "no_nodes": jax.random.normal(next(keys), (1, E), jnp.float32) * 0.1,
        "comps_lstm": lstm_p(E, E),
        "nodes_lstm": lstm_p(E, E),
    }


def build_node_tables(tree):
    """Flatten the static tree into int32 tables, children-first, root last."""
    flat = []

    def visit(node):
        child_ids = [visit(ch) for ch in node["child_list"]]
        flat.append((node, child_ids))
        return len(flat) - 1

    visit(tree)
    num_nodes = len(flat)
    max_children = max(1, max(len(c) for _, c in flat))
    max_comps = max([1] + [len(nd["computations_indices"])
                           for nd, _ in flat if nd["has_comps"]])
    child_tbl = [[0] * max_children for _ in range(num_nodes)]
    nchild = [0] * num_nodes
    comp_tbl = [[0] * max_comps for _ in range(num_nodes)]
    ncomp = [0] * num_nodes
    loop_idx = [0] * num_nodes
    for nid, (nd, child_ids) in enumerate(flat):
        nchild[nid] = len(child_ids)
        child_tbl[nid][:len(child_ids)] = child_ids
        if nd["has_comps"]:
            ci = list(nd["computations_indices"])
            ncomp[nid] = len(ci)
            comp_tbl[nid][:len(ci)] = ci
        loop_idx[nid] = int(nd["loop_index"])
    to = lambda a: jnp.array(a, dtype=jnp.int32)
    return to(child_tbl), to(nchild), to(comp_tbl), to(ncomp), to(loop_idx)


def ref_forward(tree, comps_tensor, loops_tensor, params):
    """Pure-JAX reference mirroring the PyTorch module (eval mode)."""
    E = params["no_nodes"].shape[1]
    B = comps_tensor.shape[0]
    hi = jax.lax.Precision.HIGHEST

    def mm(a, b):
        return jnp.matmul(a, b, precision=hi)

    def mlp(x, layers):
        for w, b in layers:
            x = _elu(mm(x, w) + b)
        return x

    def lstm_last_h(seq, wih, whh, b):
        H = whh.shape[0]
        h = jnp.zeros((seq.shape[0], H), jnp.float32)
        c = jnp.zeros((seq.shape[0], H), jnp.float32)
        for t in range(seq.shape[1]):
            g = mm(seq[:, t, :], wih) + mm(h, whh) + b
            i = jax.nn.sigmoid(g[:, 0:H])
            f = jax.nn.sigmoid(g[:, H:2 * H])
            gg = jnp.tanh(g[:, 2 * H:3 * H])
            o = jax.nn.sigmoid(g[:, 3 * H:4 * H])
            c = f * c + i * gg
            h = o * jnp.tanh(c)
        return h

    comps_emb = mlp(comps_tensor, params["comp"])

    def get_hidden(node):
        childs = [get_hidden(ch) for ch in node["child_list"]]
        if childs:
            seq = jnp.concatenate(childs, axis=1)
            nodes_h = lstm_last_h(seq, *params["nodes_lstm"])[:, None, :]
        else:
            nodes_h = jnp.broadcast_to(params["no_nodes"][None, :, :], (B, 1, E))
        if node["has_comps"]:
            idx = jnp.array(node["computations_indices"], dtype=jnp.int32)
            sel = jnp.take(comps_emb, idx, axis=1)
            comps_h = lstm_last_h(sel, *params["comps_lstm"])[:, None, :]
        else:
            comps_h = jnp.broadcast_to(params["no_comps"][None, :, :], (B, 1, E))
        li = int(node["loop_index"])
        lf = loops_tensor[:, li:li + 1, :]
        x = jnp.concatenate([nodes_h, comps_h, lf], axis=2)
        return mlp(x, params["concat"])

    prog = get_hidden(tree)
    x = mlp(prog, params["reg"])
    w, b = params["predict"]
    return _elu(mm(x, w) + b)[:, 0, 0]


# ----------------------------------------------------------------------------
if __name__ == "__main__":
    key = jax.random.PRNGKey(0)
    k_param, k_comps, k_loops = jax.random.split(key, 3)

    # Small shapes: batch=2, num_comps=3, input_size=32, num_loops=3, loop_feat=20.
    B, C, INPUT_SIZE, NUM_LOOPS = 2, 3, 32, 3
    COMP_EMBED_SIZES = [64, 48, 40, 32]   # embedding size E = 32 -> 4H = 128 lanes

    params = init_params(k_param, INPUT_SIZE, COMP_EMBED_SIZES)
    comps_tensor = jax.random.normal(k_comps, (B, C, INPUT_SIZE), jnp.float32)
    loops_tensor = jax.random.normal(k_loops, (B, NUM_LOOPS, 20), jnp.float32)

    # Static tree (traversed on the host only to build the SMEM index tables).
    tree = {
        "child_list": [
            {"child_list": [
                 {"child_list": [], "has_comps": True,
                  "computations_indices": [2], "loop_index": 2}],
             "has_comps": True, "computations_indices": [0, 1], "loop_index": 1},
            {"child_list": [], "has_comps": False, "loop_index": 1},
        ],
        "has_comps": False,
        "loop_index": 0,
    }
    node_tables = build_node_tables(tree)

    fwd = jax.jit(forward)
    out = jax.block_until_ready(fwd(node_tables, comps_tensor, loops_tensor, params))
    assert out.shape == (B,) and out.dtype == jnp.float32

    ref = jax.block_until_ready(ref_forward(tree, comps_tensor, loops_tensor, params))
    # f32 everywhere; tolerance covers MXU multi-pass vs XLA accumulation-order
    # differences while still catching any unintended low-precision cast.
    assert jnp.allclose(out, ref, rtol=2e-3, atol=2e-3), (out, ref)
    print("KERNEL_OK")
</pallas_src>

<mosaic_0001>
module attributes {stable_mosaic.version = 11 : i64} {
  func.func @_fused_forward_kernel(%arg0: memref<8xi32, #tpu.memory_space<smem>>, %arg1: memref<4xi32, #tpu.memory_space<smem>>, %arg2: memref<8xi32, #tpu.memory_space<smem>>, %arg3: memref<4xi32, #tpu.memory_space<smem>>, %arg4: memref<4xi32, #tpu.memory_space<smem>>, %arg5: memref<2x3x32xf32, #tpu.memory_space<vmem>>, %arg6: memref<2x3x20xf32, #tpu.memory_space<vmem>>, %arg7: memref<32x64xf32, #tpu.memory_space<vmem>>, %arg8: memref<1x64xf32, #tpu.memory_space<vmem>>, %arg9: memref<64x48xf32, #tpu.memory_space<vmem>>, %arg10: memref<1x48xf32, #tpu.memory_space<vmem>>, %arg11: memref<48x40xf32, #tpu.memory_space<vmem>>, %arg12: memref<1x40xf32, #tpu.memory_space<vmem>>, %arg13: memref<40x32xf32, #tpu.memory_space<vmem>>, %arg14: memref<1x32xf32, #tpu.memory_space<vmem>>, %arg15: memref<32x128xf32, #tpu.memory_space<vmem>>, %arg16: memref<32x128xf32, #tpu.memory_space<vmem>>, %arg17: memref<1x128xf32, #tpu.memory_space<vmem>>, %arg18: memref<32x128xf32, #tpu.memory_space<vmem>>, %arg19: memref<32x128xf32, #tpu.memory_space<vmem>>, %arg20: memref<1x128xf32, #tpu.memory_space<vmem>>, %arg21: memref<1x32xf32, #tpu.memory_space<vmem>>, %arg22: memref<1x32xf32, #tpu.memory_space<vmem>>, %arg23: memref<84x40xf32, #tpu.memory_space<vmem>>, %arg24: memref<1x40xf32, #tpu.memory_space<vmem>>, %arg25: memref<40x32xf32, #tpu.memory_space<vmem>>, %arg26: memref<1x32xf32, #tpu.memory_space<vmem>>, %arg27: memref<32x40xf32, #tpu.memory_space<vmem>>, %arg28: memref<1x40xf32, #tpu.memory_space<vmem>>, %arg29: memref<40x32xf32, #tpu.memory_space<vmem>>, %arg30: memref<1x32xf32, #tpu.memory_space<vmem>>, %arg31: memref<32x1xf32, #tpu.memory_space<vmem>>, %arg32: memref<1x1xf32, #tpu.memory_space<vmem>>, %arg33: memref<2x1xf32, #tpu.memory_space<vmem>>, %arg34: memref<3x2x128xf32, #tpu.memory_space<vmem>>, %arg35: memref<3x2x20xf32, #tpu.memory_space<vmem>>, %arg36: memref<4x2x128xf32, #tpu.memory_space<vmem>>, %arg37: memref<2x32xf32, #tpu.memory_space<vmem>>) attributes {dimension_semantics = [], scalar_prefetch = 0 : i64, scratch_operands = 4 : i64, tpu.core_type = #tpu.core_type<tc>} {
    %c0 = arith.constant 0 : index
    %c0_0 = arith.constant 0 : index
    %0 = vector.load %arg7[%c0, %c0_0] : memref<32x64xf32, #tpu.memory_space<vmem>>, vector<32x64xf32>
    %c0_1 = arith.constant 0 : index
    %c0_2 = arith.constant 0 : index
    %1 = vector.load %arg8[%c0_1, %c0_2] : memref<1x64xf32, #tpu.memory_space<vmem>>, vector<1x64xf32>
    %c0_3 = arith.constant 0 : index
    %c0_4 = arith.constant 0 : index
    %2 = vector.load %arg9[%c0_3, %c0_4] : memref<64x48xf32, #tpu.memory_space<vmem>>, vector<64x48xf32>
    %c0_5 = arith.constant 0 : index
    %c0_6 = arith.constant 0 : index
    %3 = vector.load %arg10[%c0_5, %c0_6] : memref<1x48xf32, #tpu.memory_space<vmem>>, vector<1x48xf32>
    %c0_7 = arith.constant 0 : index
    %c0_8 = arith.constant 0 : index
    %4 = vector.load %arg11[%c0_7, %c0_8] : memref<48x40xf32, #tpu.memory_space<vmem>>, vector<48x40xf32>
    %c0_9 = arith.constant 0 : index
    %c0_10 = arith.constant 0 : index
    %5 = vector.load %arg12[%c0_9, %c0_10] : memref<1x40xf32, #tpu.memory_space<vmem>>, vector<1x40xf32>
    %c0_11 = arith.constant 0 : index
    %c0_12 = arith.constant 0 : index
    %6 = vector.load %arg13[%c0_11, %c0_12] : memref<40x32xf32, #tpu.memory_space<vmem>>, vector<40x32xf32>
    %c0_13 = arith.constant 0 : index
    %c0_14 = arith.constant 0 : index
    %7 = vector.load %arg14[%c0_13, %c0_14] : memref<1x32xf32, #tpu.memory_space<vmem>>, vector<1x32xf32>
    %c0_15 = arith.constant 0 : index
    %c0_16 = arith.constant 0 : index
    %8 = vector.load %arg15[%c0_15, %c0_16] : memref<32x128xf32, #tpu.memory_space<vmem>>, vector<32x128xf32>
    %c0_17 = arith.constant 0 : index
    %c0_18 = arith.constant 0 : index
    %9 = vector.load %arg17[%c0_17, %c0_18] : memref<1x128xf32, #tpu.memory_space<vmem>>, vector<1x128xf32>
    %c0_19 = arith.constant 0 : index
    %c0_20 = arith.constant 0 : index
    %c0_21 = arith.constant 0 : index
    %10 = vector.load %arg5[%c0_19, %c0_20, %c0_21] : memref<2x3x32xf32, #tpu.memory_space<vmem>>, vector<2x1x32xf32>
    %11 = vector.shape_cast %10 : vector<2x1x32xf32> to vector<2x32xf32>
    %cst = arith.constant dense<0.000000e+00> : vector<2x64xf32>
    %12 = tpu.matmul %11, %0, %cst {dimension_numbers = #tpu.dot_dimension_numbers<[1], [0], [0], [1], [0, 0, 1, 1], [], []>} : vector<2x32xf32>, vector<32x64xf32>, vector<2x64xf32> -> vector<2x64xf32>
    %13 = vector.broadcast %1 : vector<1x64xf32> to vector<2x64xf32>
    %14 = arith.addf %12, %13 : vector<2x64xf32>
    %cst_22 = arith.constant 0.000000e+00 : f32
    %15 = vector.broadcast %cst_22 : f32 to vector<2x64xf32>
    %16 = arith.cmpf ogt, %14, %15 : vector<2x64xf32>
    %17 = math.exp %14 : vector<2x64xf32>
    %cst_23 = arith.constant 1.000000e+00 : f32
    %18 = vector.broadcast %cst_23 : f32 to vector<2x64xf32>
    %19 = arith.subf %17, %18 : vector<2x64xf32>
    %20 = arith.select %16, %14, %19 : vector<2x64xi1>, vector<2x64xf32>
    %cst_24 = arith.constant dense<0.000000e+00> : vector<2x48xf32>
    %21 = tpu.matmul %20, %2, %cst_24 {dimension_numbers = #tpu.dot_dimension_numbers<[1], [0], [0], [1], [0, 0, 1, 1], [], []>} : vector<2x64xf32>, vector<64x48xf32>, vector<2x48xf32> -> vector<2x48xf32>
    %22 = vector.broadcast %3 : vector<1x48xf32> to vector<2x48xf32>
    %23 = arith.addf %21, %22 : vector<2x48xf32>
    %cst_25 = arith.constant 0.000000e+00 : f32
    %24 = vector.broadcast %cst_25 : f32 to vector<2x48xf32>
    %25 = arith.cmpf ogt, %23, %24 : vector<2x48xf32>
    %26 = math.exp %23 : vector<2x48xf32>
    %cst_26 = arith.constant 1.000000e+00 : f32
    %27 = vector.broadcast %cst_26 : f32 to vector<2x48xf32>
    %28 = arith.subf %26, %27 : vector<2x48xf32>
    %29 = arith.select %25, %23, %28 : vector<2x48xi1>, vector<2x48xf32>
    %cst_27 = arith.constant dense<0.000000e+00> : vector<2x40xf32>
    %30 = tpu.matmul %29, %4, %cst_27 {dimension_numbers = #tpu.dot_dimension_numbers<[1], [0], [0], [1], [0, 0, 1, 1], [], []>} : vector<2x48xf32>, vector<48x40xf32>, vector<2x40xf32> -> vector<2x40xf32>
    %31 = vector.broadcast %5 : vector<1x40xf32> to vector<2x40xf32>
    %32 = arith.addf %30, %31 : vector<2x40xf32>
    %cst_28 = arith.constant 0.000000e+00 : f32
    %33 = vector.broadcast %cst_28 : f32 to vector<2x40xf32>
    %34 = arith.cmpf ogt, %32, %33 : vector<2x40xf32>
    %35 = math.exp %32 : vector<2x40xf32>
    %cst_29 = arith.constant 1.000000e+00 : f32
    %36 = vector.broadcast %cst_29 : f32 to vector<2x40xf32>
    %37 = arith.subf %35, %36 : vector<2x40xf32>
    %38 = arith.select %34, %32, %37 : vector<2x40xi1>, vector<2x40xf32>
    %cst_30 = arith.constant dense<0.000000e+00> : vector<2x32xf32>
    %39 = tpu.matmul %38, %6, %cst_30 {dimension_numbers = #tpu.dot_dimension_numbers<[1], [0], [0], [1], [0, 0, 1, 1], [], []>} : vector<2x40xf32>, vector<40x32xf32>, vector<2x32xf32> -> vector<2x32xf32>
    %40 = vector.broadcast %7 : vector<1x32xf32> to vector<2x32xf32>
    %41 = arith.addf %39, %40 : vector<2x32xf32>
    %cst_31 = arith.constant 0.000000e+00 : f32
    %42 = vector.broadcast %cst_31 : f32 to vector<2x32xf32>
    %43 = arith.cmpf ogt, %41, %42 : vector<2x32xf32>
    %44 = math.exp %41 : vector<2x32xf32>
    %cst_32 = arith.constant 1.000000e+00 : f32
    %45 = vector.broadcast %cst_32 : f32 to vector<2x32xf32>
    %46 = arith.subf %44, %45 : vector<2x32xf32>
    %47 = arith.select %43, %41, %46 : vector<2x32xi1>, vector<2x32xf32>
    %cst_33 = arith.constant dense<0.000000e+00> : vector<2x128xf32>
    %48 = tpu.matmul %47, %8, %cst_33 {dimension_numbers = #tpu.dot_dimension_numbers<[1], [0], [0], [1], [0, 0, 1, 1], [], []>} : vector<2x32xf32>, vector<32x128xf32>, vector<2x128xf32> -> vector<2x128xf32>
    %49 = vector.broadcast %9 : vector<1x128xf32> to vector<2x128xf32>
    %50 = arith.addf %48, %49 : vector<2x128xf32>
    %c0_34 = arith.constant 0 : index
    %c0_35 = arith.constant 0 : index
    %c0_36 = arith.constant 0 : index
    %51 = vector.load %arg34[%c0_34, %c0_35, %c0_36] : memref<3x2x128xf32, #tpu.memory_space<vmem>>, vector<1x2x128xf32>
    %52 = vector.shape_cast %51 : vector<1x2x128xf32> to vector<2x128xf32>
    %53 = vector.shape_cast %50 : vector<2x128xf32> to vector<1x2x128xf32>
    tpu.vector_store %arg34[%c0_34, %c0_35, %c0_36], %53 {strides = array<i32>} : memref<3x2x128xf32, #tpu.memory_space<vmem>>, vector<1x2x128xf32>,
    %c0_37 = arith.constant 0 : index
    %c1 = arith.constant 1 : index
    %c0_38 = arith.constant 0 : index
    %54 = vector.load %arg5[%c0_37, %c1, %c0_38] : memref<2x3x32xf32, #tpu.memory_space<vmem>>, vector<2x1x32xf32>
    %55 = vector.shape_cast %54 : vector<2x1x32xf32> to vector<2x32xf32>
    %cst_39 = arith.constant dense<0.000000e+00> : vector<2x64xf32>
    %56 = tpu.matmul %55, %0, %cst_39 {dimension_numbers = #tpu.dot_dimension_numbers<[1], [0], [0], [1], [0, 0, 1, 1], [], []>} : vector<2x32xf32>, vector<32x64xf32>, vector<2x64xf32> -> vector<2x64xf32>
    %57 = vector.broadcast %1 : vector<1x64xf32> to vector<2x64xf32>
    %58 = arith.addf %56, %57 : vector<2x64xf32>
    %cst_40 = arith.constant 0.000000e+00 : f32
    %59 = vector.broadcast %cst_40 : f32 to vector<2x64xf32>
    %60 = arith.cmpf ogt, %58, %59 : vector<2x64xf32>
    %61 = math.exp %58 : vector<2x64xf32>
    %cst_41 = arith.constant 1.000000e+00 : f32
    %62 = vector.broadcast %cst_41 : f32 to vector<2x64xf32>
    %63 = arith.subf %61, %62 : vector<2x64xf32>
    %64 = arith.select %60, %58, %63 : vector<2x64xi1>, vector<2x64xf32>
    %cst_42 = arith.constant dense<0.000000e+00> : vector<2x48xf32>
    %65 = tpu.matmul %64, %2, %cst_42 {dimension_numbers = #tpu.dot_dimension_numbers<[1], [0], [0], [1], [0, 0, 1, 1], [], []>} : vector<2x64xf32>, vector<64x48xf32>, vector<2x48xf32> -> vector<2x48xf32>
    %66 = vector.broadcast %3 : vector<1x48xf32> to vector<2x48xf32>
    %67 = arith.addf %65, %66 : vector<2x48xf32>
    %cst_43 = arith.constant 0.000000e+00 : f32
    %68 = vector.broadcast %cst_43 : f32 to vector<2x48xf32>
    %69 = arith.cmpf ogt, %67, %68 : vector<2x48xf32>
    %70 = math.exp %67 : vector<2x48xf32>
    %cst_44 = arith.constant 1.000000e+00 : f32
    %71 = vector.broadcast %cst_44 : f32 to vector<2x48xf32>
    %72 = arith.subf %70, %71 : vector<2x48xf32>
    %73 = arith.select %69, %67, %72 : vector<2x48xi1>, vector<2x48xf32>
    %cst_45 = arith.constant dense<0.000000e+00> : vector<2x40xf32>
    %74 = tpu.matmul %73, %4, %cst_45 {dimension_numbers = #tpu.dot_dimension_numbers<[1], [0], [0], [1], [0, 0, 1, 1], [], []>} : vector<2x48xf32>, vector<48x40xf32>, vector<2x40xf32> -> vector<2x40xf32>
    %75 = vector.broadcast %5 : vector<1x40xf32> to vector<2x40xf32>
    %76 = arith.addf %74, %75 : vector<2x40xf32>
    %cst_46 = arith.constant 0.000000e+00 : f32
    %77 = vector.broadcast %cst_46 : f32 to vector<2x40xf32>
    %78 = arith.cmpf ogt, %76, %77 : vector<2x40xf32>
    %79 = math.exp %76 : vector<2x40xf32>
    %cst_47 = arith.constant 1.000000e+00 : f32
    %80 = vector.broadcast %cst_47 : f32 to vector<2x40xf32>
    %81 = arith.subf %79, %80 : vector<2x40xf32>
    %82 = arith.select %78, %76, %81 : vector<2x40xi1>, vector<2x40xf32>
    %cst_48 = arith.constant dense<0.000000e+00> : vector<2x32xf32>
    %83 = tpu.matmul %82, %6, %cst_48 {dimension_numbers = #tpu.dot_dimension_numbers<[1], [0], [0], [1], [0, 0, 1, 1], [], []>} : vector<2x40xf32>, vector<40x32xf32>, vector<2x32xf32> -> vector<2x32xf32>
    %84 = vector.broadcast %7 : vector<1x32xf32> to vector<2x32xf32>
    %85 = arith.addf %83, %84 : vector<2x32xf32>
    %cst_49 = arith.constant 0.000000e+00 : f32
    %86 = vector.broadcast %cst_49 : f32 to vector<2x32xf32>
    %87 = arith.cmpf ogt, %85, %86 : vector<2x32xf32>
    %88 = math.exp %85 : vector<2x32xf32>
    %cst_50 = arith.constant 1.000000e+00 : f32
    %89 = vector.broadcast %cst_50 : f32 to vector<2x32xf32>
    %90 = arith.subf %88, %89 : vector<2x32xf32>
    %91 = arith.select %87, %85, %90 : vector<2x32xi1>, vector<2x32xf32>
    %cst_51 = arith.constant dense<0.000000e+00> : vector<2x128xf32>
    %92 = tpu.matmul %91, %8, %cst_51 {dimension_numbers = #tpu.dot_dimension_numbers<[1], [0], [0], [1], [0, 0, 1, 1], [], []>} : vector<2x32xf32>, vector<32x128xf32>, vector<2x128xf32> -> vector<2x128xf32>
    %93 = vector.broadcast %9 : vector<1x128xf32> to vector<2x128xf32>
    %94 = arith.addf %92, %93 : vector<2x128xf32>
    %c1_52 = arith.constant 1 : index
    %c0_53 = arith.constant 0 : index
    %c0_54 = arith.constant 0 : index
    %95 = vector.load %arg34[%c1_52, %c0_53, %c0_54] : memref<3x2x128xf32, #tpu.memory_space<vmem>>, vector<1x2x128xf32>
    %96 = vector.shape_cast %95 : vector<1x2x128xf32> to vector<2x128xf32>
    %97 = vector.shape_cast %94 : vector<2x128xf32> to vector<1x2x128xf32>
    tpu.vector_store %arg34[%c1_52, %c0_53, %c0_54], %97 {strides = array<i32>} : memref<3x2x128xf32, #tpu.memory_space<vmem>>, vector<1x2x128xf32>,
    %c0_55 = arith.constant 0 : index
    %c2 = arith.constant 2 : index
    %c0_56 = arith.constant 0 : index
    %98 = vector.load %arg5[%c0_55, %c2, %c0_56] : memref<2x3x32xf32, #tpu.memory_space<vmem>>, vector<2x1x32xf32>
    %99 = vector.shape_cast %98 : vector<2x1x32xf32> to vector<2x32xf32>
    %cst_57 = arith.constant dense<0.000000e+00> : vector<2x64xf32>
    %100 = tpu.matmul %99, %0, %cst_57 {dimension_numbers = #tpu.dot_dimension_numbers<[1], [0], [0], [1], [0, 0, 1, 1], [], []>} : vector<2x32xf32>, vector<32x64xf32>, vector<2x64xf32> -> vector<2x64xf32>
    %101 = vector.broadcast %1 : vector<1x64xf32> to vector<2x64xf32>
    %102 = arith.addf %100, %101 : vector<2x64xf32>
    %cst_58 = arith.constant 0.000000e+00 : f32
    %103 = vector.broadcast %cst_58 : f32 to vector<2x64xf32>
    %104 = arith.cmpf ogt, %102, %103 : vector<2x64xf32>
    %105 = math.exp %102 : vector<2x64xf32>
    %cst_59 = arith.constant 1.000000e+00 : f32
    %106 = vector.broadcast %cst_59 : f32 to vector<2x64xf32>
    %107 = arith.subf %105, %106 : vector<2x64xf32>
    %108 = arith.select %104, %102, %107 : vector<2x64xi1>, vector<2x64xf32>
    %cst_60 = arith.constant dense<0.000000e+00> : vector<2x48xf32>
    %109 = tpu.matmul %108, %2, %cst_60 {dimension_numbers = #tpu.dot_dimension_numbers<[1], [0], [0], [1], [0, 0, 1, 1], [], []>} : vector<2x64xf32>, vector<64x48xf32>, vector<2x48xf32> -> vector<2x48xf32>
    %110 = vector.broadcast %3 : vector<1x48xf32> to vector<2x48xf32>
    %111 = arith.addf %109, %110 : vector<2x48xf32>
    %cst_61 = arith.constant 0.000000e+00 : f32
    %112 = vector.broadcast %cst_61 : f32 to vector<2x48xf32>
    %113 = arith.cmpf ogt, %111, %112 : vector<2x48xf32>
    %114 = math.exp %111 : vector<2x48xf32>
    %cst_62 = arith.constant 1.000000e+00 : f32
    %115 = vector.broadcast %cst_62 : f32 to vector<2x48xf32>
    %116 = arith.subf %114, %115 : vector<2x48xf32>
    %117 = arith.select %113, %111, %116 : vector<2x48xi1>, vector<2x48xf32>
    %cst_63 = arith.constant dense<0.000000e+00> : vector<2x40xf32>
    %118 = tpu.matmul %117, %4, %cst_63 {dimension_numbers = #tpu.dot_dimension_numbers<[1], [0], [0], [1], [0, 0, 1, 1], [], []>} : vector<2x48xf32>, vector<48x40xf32>, vector<2x40xf32> -> vector<2x40xf32>
    %119 = vector.broadcast %5 : vector<1x40xf32> to vector<2x40xf32>
    %120 = arith.addf %118, %119 : vector<2x40xf32>
    %cst_64 = arith.constant 0.000000e+00 : f32
    %121 = vector.broadcast %cst_64 : f32 to vector<2x40xf32>
    %122 = arith.cmpf ogt, %120, %121 : vector<2x40xf32>
    %123 = math.exp %120 : vector<2x40xf32>
    %cst_65 = arith.constant 1.000000e+00 : f32
    %124 = vector.broadcast %cst_65 : f32 to vector<2x40xf32>
    %125 = arith.subf %123, %124 : vector<2x40xf32>
    %126 = arith.select %122, %120, %125 : vector<2x40xi1>, vector<2x40xf32>
    %cst_66 = arith.constant dense<0.000000e+00> : vector<2x32xf32>
    %127 = tpu.matmul %126, %6, %cst_66 {dimension_numbers = #tpu.dot_dimension_numbers<[1], [0], [0], [1], [0, 0, 1, 1], [], []>} : vector<2x40xf32>, vector<40x32xf32>, vector<2x32xf32> -> vector<2x32xf32>
    %128 = vector.broadcast %7 : vector<1x32xf32> to vector<2x32xf32>
    %129 = arith.addf %127, %128 : vector<2x32xf32>
    %cst_67 = arith.constant 0.000000e+00 : f32
    %130 = vector.broadcast %cst_67 : f32 to vector<2x32xf32>
    %131 = arith.cmpf ogt, %129, %130 : vector<2x32xf32>
    %132 = math.exp %129 : vector<2x32xf32>
    %cst_68 = arith.constant 1.000000e+00 : f32
    %133 = vector.broadcast %cst_68 : f32 to vector<2x32xf32>
    %134 = arith.subf %132, %133 : vector<2x32xf32>
    %135 = arith.select %131, %129, %134 : vector<2x32xi1>, vector<2x32xf32>
    %cst_69 = arith.constant dense<0.000000e+00> : vector<2x128xf32>
    %136 = tpu.matmul %135, %8, %cst_69 {dimension_numbers = #tpu.dot_dimension_numbers<[1], [0], [0], [1], [0, 0, 1, 1], [], []>} : vector<2x32xf32>, vector<32x128xf32>, vector<2x128xf32> -> vector<2x128xf32>
    %137 = vector.broadcast %9 : vector<1x128xf32> to vector<2x128xf32>
    %138 = arith.addf %136, %137 : vector<2x128xf32>
    %c2_70 = arith.constant 2 : index
    %c0_71 = arith.constant 0 : index
    %c0_72 = arith.constant 0 : index
    %139 = vector.load %arg34[%c2_70, %c0_71, %c0_72] : memref<3x2x128xf32, #tpu.memory_space<vmem>>, vector<1x2x128xf32>
    %140 = vector.shape_cast %139 : vector<1x2x128xf32> to vector<2x128xf32>
    %141 = vector.shape_cast %138 : vector<2x128xf32> to vector<1x2x128xf32>
    tpu.vector_store %arg34[%c2_70, %c0_71, %c0_72], %141 {strides = array<i32>} : memref<3x2x128xf32, #tpu.memory_space<vmem>>, vector<1x2x128xf32>,
    %c0_73 = arith.constant 0 : index
    %c0_74 = arith.constant 0 : index
    %c0_75 = arith.constant 0 : index
    %142 = vector.load %arg6[%c0_73, %c0_74, %c0_75] : memref<2x3x20xf32, #tpu.memory_space<vmem>>, vector<2x1x20xf32>
    %143 = vector.shape_cast %142 : vector<2x1x20xf32> to vector<2x20xf32>
    %c0_76 = arith.constant 0 : index
    %c0_77 = arith.constant 0 : index
    %c0_78 = arith.constant 0 : index
    %144 = vector.load %arg35[%c0_76, %c0_77, %c0_78] : memref<3x2x20xf32, #tpu.memory_space<vmem>>, vector<1x2x20xf32>
    %145 = vector.shape_cast %144 : vector<1x2x20xf32> to vector<2x20xf32>
    %146 = vector.shape_cast %143 : vector<2x20xf32> to vector<1x2x20xf32>
    tpu.vector_store %arg35[%c0_76, %c0_77, %c0_78], %146 {strides = array<i32>} : memref<3x2x20xf32, #tpu.memory_space<vmem>>, vector<1x2x20xf32>,
    %c0_79 = arith.constant 0 : index
    %c1_80 = arith.constant 1 : index
    %c0_81 = arith.constant 0 : index
    %147 = vector.load %arg6[%c0_79, %c1_80, %c0_81] : memref<2x3x20xf32, #tpu.memory_space<vmem>>, vector<2x1x20xf32>
    %148 = vector.shape_cast %147 : vector<2x1x20xf32> to vector<2x20xf32>
    %c1_82 = arith.constant 1 : index
    %c0_83 = arith.constant 0 : index
    %c0_84 = arith.constant 0 : index
    %149 = vector.load %arg35[%c1_82, %c0_83, %c0_84] : memref<3x2x20xf32, #tpu.memory_space<vmem>>, vector<1x2x20xf32>
    %150 = vector.shape_cast %149 : vector<1x2x20xf32> to vector<2x20xf32>
    %151 = vector.shape_cast %148 : vector<2x20xf32> to vector<1x2x20xf32>
    tpu.vector_store %arg35[%c1_82, %c0_83, %c0_84], %151 {strides = array<i32>} : memref<3x2x20xf32, #tpu.memory_space<vmem>>, vector<1x2x20xf32>,
    %c0_85 = arith.constant 0 : index
    %c2_86 = arith.constant 2 : index
    %c0_87 = arith.constant 0 : index
    %152 = vector.load %arg6[%c0_85, %c2_86, %c0_87] : memref<2x3x20xf32, #tpu.memory_space<vmem>>, vector<2x1x20xf32>
    %153 = vector.shape_cast %152 : vector<2x1x20xf32> to vector<2x20xf32>
    %c2_88 = arith.constant 2 : index
    %c0_89 = arith.constant 0 : index
    %c0_90 = arith.constant 0 : index
    %154 = vector.load %arg35[%c2_88, %c0_89, %c0_90] : memref<3x2x20xf32, #tpu.memory_space<vmem>>, vector<1x2x20xf32>
    %155 = vector.shape_cast %154 : vector<1x2x20xf32> to vector<2x20xf32>
    %156 = vector.shape_cast %153 : vector<2x20xf32> to vector<1x2x20xf32>
    tpu.vector_store %arg35[%c2_88, %c0_89, %c0_90], %156 {strides = array<i32>} : memref<3x2x20xf32, #tpu.memory_space<vmem>>, vector<1x2x20xf32>,
    %c0_91 = arith.constant 0 : index
    %c0_92 = arith.constant 0 : index
    %157 = vector.load %arg19[%c0_91, %c0_92] : memref<32x128xf32, #tpu.memory_space<vmem>>, vector<32x128xf32>
    %c0_93 = arith.constant 0 : index
    %c0_94 = arith.constant 0 : index
    %158 = vector.load %arg16[%c0_93, %c0_94] : memref<32x128xf32, #tpu.memory_space<vmem>>, vector<32x128xf32>
    %c0_95 = arith.constant 0 : index
    %c0_96 = arith.constant 0 : index
    %159 = vector.load %arg18[%c0_95, %c0_96] : memref<32x128xf32, #tpu.memory_space<vmem>>, vector<32x128xf32>
    %c0_97 = arith.constant 0 : index
    %c0_98 = arith.constant 0 : index
    %160 = vector.load %arg20[%c0_97, %c0_98] : memref<1x128xf32, #tpu.memory_space<vmem>>, vector<1x128xf32>
    %c0_99 = arith.constant 0 : index
    %c0_100 = arith.constant 0 : index
    %161 = vector.load %arg21[%c0_99, %c0_100] : memref<1x32xf32, #tpu.memory_space<vmem>>, vector<1x32xf32>
    %162 = vector.shape_cast %161 : vector<1x32xf32> to vector<1x32xf32>
    %163 = vector.broadcast %162 : vector<1x32xf32> to vector<2x32xf32>
    %c0_101 = arith.constant 0 : index
    %c0_102 = arith.constant 0 : index
    %164 = vector.load %arg22[%c0_101, %c0_102] : memref<1x32xf32, #tpu.memory_space<vmem>>, vector<1x32xf32>
    %165 = vector.shape_cast %164 : vector<1x32xf32> to vector<1x32xf32>
    %166 = vector.broadcast %165 : vector<1x32xf32> to vector<2x32xf32>
    %c0_103 = arith.constant 0 : index
    %c0_104 = arith.constant 0 : index
    %167 = vector.load %arg23[%c0_103, %c0_104] : memref<84x40xf32, #tpu.memory_space<vmem>>, vector<32x40xf32>
    %c32 = arith.constant 32 : index
    %c0_105 = arith.constant 0 : index
    %168 = vector.load %arg23[%c32, %c0_105] : memref<84x40xf32, #tpu.memory_space<vmem>>, vector<32x40xf32>
    %c64 = arith.constant 64 : index
    %c0_106 = arith.constant 0 : index
    %169 = vector.load %arg23[%c64, %c0_106] : memref<84x40xf32, #tpu.memory_space<vmem>>, vector<20x40xf32>
    %c0_107 = arith.constant 0 : index
    %c0_108 = arith.constant 0 : index
    %170 = vector.load %arg24[%c0_107, %c0_108] : memref<1x40xf32, #tpu.memory_space<vmem>>, vector<1x40xf32>
    %c0_109 = arith.constant 0 : index
    %c0_110 = arith.constant 0 : index
    %171 = vector.load %arg25[%c0_109, %c0_110] : memref<40x32xf32, #tpu.memory_space<vmem>>, vector<40x32xf32>
    %c0_111 = arith.constant 0 : index
    %c0_112 = arith.constant 0 : index
    %172 = vector.load %arg26[%c0_111, %c0_112] : memref<1x32xf32, #tpu.memory_space<vmem>>, vector<1x32xf32>
    %cst_113 = arith.constant 0.000000e+00 : f32
    %173 = vector.broadcast %cst_113 : f32 to vector<2x128xf32>
    %c0_114 = arith.constant 0 : index
    %c0_115 = arith.constant 0 : index
    %c0_116 = arith.constant 0 : index
    %174 = vector.load %arg36[%c0_114, %c0_115, %c0_116] : memref<4x2x128xf32, #tpu.memory_space<vmem>>, vector<1x2x128xf32>
    %175 = vector.shape_cast %174 : vector<1x2x128xf32> to vector<2x128xf32>
    %176 = vector.shape_cast %173 : vector<2x128xf32> to vector<1x2x128xf32>
    tpu.vector_store %arg36[%c0_114, %c0_115, %c0_116], %176 {strides = array<i32>} : memref<4x2x128xf32, #tpu.memory_space<vmem>>, vector<1x2x128xf32>,
    %c0_i32 = arith.constant 0 : i32
    %c4_i32 = arith.constant 4 : i32
    %177 = arith.addi %c0_i32, %c4_i32 : i32
    %c1_i32 = arith.constant 1 : i32
    scf.for %arg38 = %c0_i32 to %177 step %c1_i32  : i32 {
      %213 = arith.index_cast %arg38 : i32 to index
      %214 = memref.load %arg1[%213] : memref<4xi32, #tpu.memory_space<smem>>
      %cst_143 = arith.constant 0.000000e+00 : f32
      %215 = vector.broadcast %cst_143 : f32 to vector<2x32xf32>
      %cst_144 = arith.constant 0.000000e+00 : f32
      %216 = vector.broadcast %cst_144 : f32 to vector<2x32xf32>
      %c2_i32 = arith.constant 2 : i32
      %217 = arith.muli %arg38, %c2_i32 : i32
      %c0_i32_145 = arith.constant 0 : i32
      %218 = arith.addi %217, %c0_i32_145 : i32
      %219 = arith.index_cast %218 : i32 to index
      %220 = memref.load %arg0[%219] : memref<8xi32, #tpu.memory_space<smem>>
      %221 = arith.index_cast %220 : i32 to index
      %c0_146 = arith.constant 0 : index
      %c0_147 = arith.constant 0 : index
      %222 = vector.load %arg36[%221, %c0_146, %c0_147] : memref<4x2x128xf32, #tpu.memory_space<vmem>>, vector<1x2x128xf32>
      %223 = vector.shape_cast %222 : vector<1x2x128xf32> to vector<2x128xf32>
      %cst_148 = arith.constant dense<0.000000e+00> : vector<2x128xf32>
      %224 = tpu.matmul %215, %157, %cst_148 {dimension_numbers = #tpu.dot_dimension_numbers<[1], [0], [0], [1], [0, 0, 1, 1], [], []>} : vector<2x32xf32>, vector<32x128xf32>, vector<2x128xf32> -> vector<2x128xf32>
      %225 = arith.addf %223, %224 : vector<2x128xf32>
      %226 = vector.extract_strided_slice %225 {offsets = [0, 0], sizes = [2, 32], strides = [1, 1]} : vector<2x128xf32> to vector<2x32xf32>
      %227 = arith.negf %226 : vector<2x32xf32>
      %228 = math.exp %227 : vector<2x32xf32>
      %cst_149 = arith.constant 1.000000e+00 : f32
      %229 = vector.broadcast %cst_149 : f32 to vector<2x32xf32>
      %230 = arith.addf %229, %228 : vector<2x32xf32>
      %231 = arith.divf %229, %230 : vector<2x32xf32>
      %232 = vector.extract_strided_slice %225 {offsets = [0, 32], sizes = [2, 32], strides = [1, 1]} : vector<2x128xf32> to vector<2x32xf32>
      %233 = arith.negf %232 : vector<2x32xf32>
      %234 = math.exp %233 : vector<2x32xf32>
      %cst_150 = arith.constant 1.000000e+00 : f32
      %235 = vector.broadcast %cst_150 : f32 to vector<2x32xf32>
      %236 = arith.addf %235, %234 : vector<2x32xf32>
      %237 = arith.divf %235, %236 : vector<2x32xf32>
      %238 = vector.extract_strided_slice %225 {offsets = [0, 64], sizes = [2, 32], strides = [1, 1]} : vector<2x128xf32> to vector<2x32xf32>
      %239 = math.tanh %238 : vector<2x32xf32>
      %240 = vector.extract_strided_slice %225 {offsets = [0, 96], sizes = [2, 32], strides = [1, 1]} : vector<2x128xf32> to vector<2x32xf32>
      %241 = arith.negf %240 : vector<2x32xf32>
      %242 = math.exp %241 : vector<2x32xf32>
      %cst_151 = arith.constant 1.000000e+00 : f32
      %243 = vector.broadcast %cst_151 : f32 to vector<2x32xf32>
      %244 = arith.addf %243, %242 : vector<2x32xf32>
      %245 = arith.divf %243, %244 : vector<2x32xf32>
      %246 = arith.mulf %237, %216 : vector<2x32xf32>
      %247 = arith.mulf %231, %239 : vector<2x32xf32>
      %248 = arith.addf %246, %247 : vector<2x32xf32>
      %249 = math.tanh %248 : vector<2x32xf32>
      %250 = arith.mulf %245, %249 : vector<2x32xf32>
      %c0_i32_152 = arith.constant 0 : i32
      %251 = arith.cmpi sgt, %214, %c0_i32_152 : i32
      %252 = arith.select %251, %250, %215 : vector<2x32xf32>
      %253 = arith.select %251, %248, %216 : vector<2x32xf32>
      %c2_i32_153 = arith.constant 2 : i32
      %254 = arith.muli %arg38, %c2_i32_153 : i32
      %c1_i32_154 = arith.constant 1 : i32
      %255 = arith.addi %254, %c1_i32_154 : i32
      %256 = arith.index_cast %255 : i32 to index
      %257 = memref.load %arg0[%256] : memref<8xi32, #tpu.memory_space<smem>>
      %258 = arith.index_cast %257 : i32 to index
      %c0_155 = arith.constant 0 : index
      %c0_156 = arith.constant 0 : index
      %259 = vector.load %arg36[%258, %c0_155, %c0_156] : memref<4x2x128xf32, #tpu.memory_space<vmem>>, vector<1x2x128xf32>
      %260 = vector.shape_cast %259 : vector<1x2x128xf32> to vector<2x128xf32>
      %cst_157 = arith.constant dense<0.000000e+00> : vector<2x128xf32>
      %261 = tpu.matmul %252, %157, %cst_157 {dimension_numbers = #tpu.dot_dimension_numbers<[1], [0], [0], [1], [0, 0, 1, 1], [], []>} : vector<2x32xf32>, vector<32x128xf32>, vector<2x128xf32> -> vector<2x128xf32>
      %262 = arith.addf %260, %261 : vector<2x128xf32>
      %263 = vector.extract_strided_slice %262 {offsets = [0, 0], sizes = [2, 32], strides = [1, 1]} : vector<2x128xf32> to vector<2x32xf32>
      %264 = arith.negf %263 : vector<2x32xf32>
      %265 = math.exp %264 : vector<2x32xf32>
      %cst_158 = arith.constant 1.000000e+00 : f32
      %266 = vector.broadcast %cst_158 : f32 to vector<2x32xf32>
      %267 = arith.addf %266, %265 : vector<2x32xf32>
      %268 = arith.divf %266, %267 : vector<2x32xf32>
      %269 = vector.extract_strided_slice %262 {offsets = [0, 32], sizes = [2, 32], strides = [1, 1]} : vector<2x128xf32> to vector<2x32xf32>
      %270 = arith.negf %269 : vector<2x32xf32>
      %271 = math.exp %270 : vector<2x32xf32>
      %cst_159 = arith.constant 1.000000e+00 : f32
      %272 = vector.broadcast %cst_159 : f32 to vector<2x32xf32>
      %273 = arith.addf %272, %271 : vector<2x32xf32>
      %274 = arith.divf %272, %273 : vector<2x32xf32>
      %275 = vector.extract_strided_slice %262 {offsets = [0, 64], sizes = [2, 32], strides = [1, 1]} : vector<2x128xf32> to vector<2x32xf32>
      %276 = math.tanh %275 : vector<2x32xf32>
      %277 = vector.extract_strided_slice %262 {offsets = [0, 96], sizes = [2, 32], strides = [1, 1]} : vector<2x128xf32> to vector<2x32xf32>
      %278 = arith.negf %277 : vector<2x32xf32>
      %279 = math.exp %278 : vector<2x32xf32>
      %cst_160 = arith.constant 1.000000e+00 : f32
      %280 = vector.broadcast %cst_160 : f32 to vector<2x32xf32>
      %281 = arith.addf %280, %279 : vector<2x32xf32>
      %282 = arith.divf %280, %281 : vector<2x32xf32>
      %283 = arith.mulf %274, %253 : vector<2x32xf32>
      %284 = arith.mulf %268, %276 : vector<2x32xf32>
      %285 = arith.addf %283, %284 : vector<2x32xf32>
      %286 = math.tanh %285 : vector<2x32xf32>
      %287 = arith.mulf %282, %286 : vector<2x32xf32>
      %c1_i32_161 = arith.constant 1 : i32
      %288 = arith.cmpi sgt, %214, %c1_i32_161 : i32
      %289 = arith.select %288, %287, %252 : vector<2x32xf32>
      %c0_i32_162 = arith.constant 0 : i32
      %290 = arith.cmpi sgt, %214, %c0_i32_162 : i32
      %291 = arith.select %290, %289, %163 : vector<2x32xf32>
      %292 = arith.index_cast %arg38 : i32 to index
      %293 = memref.load %arg3[%292] : memref<4xi32, #tpu.memory_space<smem>>
      %cst_163 = arith.constant 0.000000e+00 : f32
      %294 = vector.broadcast %cst_163 : f32 to vector<2x32xf32>
      %cst_164 = arith.constant 0.000000e+00 : f32
      %295 = vector.broadcast %cst_164 : f32 to vector<2x32xf32>
      %c2_i32_165 = arith.constant 2 : i32
      %296 = arith.muli %arg38, %c2_i32_165 : i32
      %c0_i32_166 = arith.constant 0 : i32
      %297 = arith.addi %296, %c0_i32_166 : i32
      %298 = arith.index_cast %297 : i32 to index
      %299 = memref.load %arg2[%298] : memref<8xi32, #tpu.memory_space<smem>>
      %300 = arith.index_cast %299 : i32 to index
      %c0_167 = arith.constant 0 : index
      %c0_168 = arith.constant 0 : index
      %301 = vector.load %arg34[%300, %c0_167, %c0_168] : memref<3x2x128xf32, #tpu.memory_space<vmem>>, vector<1x2x128xf32>
      %302 = vector.shape_cast %301 : vector<1x2x128xf32> to vector<2x128xf32>
      %cst_169 = arith.constant dense<0.000000e+00> : vector<2x128xf32>
      %303 = tpu.matmul %294, %158, %cst_169 {dimension_numbers = #tpu.dot_dimension_numbers<[1], [0], [0], [1], [0, 0, 1, 1], [], []>} : vector<2x32xf32>, vector<32x128xf32>, vector<2x128xf32> -> vector<2x128xf32>
      %304 = arith.addf %302, %303 : vector<2x128xf32>
      %305 = vector.extract_strided_slice %304 {offsets = [0, 0], sizes = [2, 32], strides = [1, 1]} : vector<2x128xf32> to vector<2x32xf32>
      %306 = arith.negf %305 : vector<2x32xf32>
      %307 = math.exp %306 : vector<2x32xf32>
      %cst_170 = arith.constant 1.000000e+00 : f32
      %308 = vector.broadcast %cst_170 : f32 to vector<2x32xf32>
      %309 = arith.addf %308, %307 : vector<2x32xf32>
      %310 = arith.divf %308, %309 : vector<2x32xf32>
      %311 = vector.extract_strided_slice %304 {offsets = [0, 32], sizes = [2, 32], strides = [1, 1]} : vector<2x128xf32> to vector<2x32xf32>
      %312 = arith.negf %311 : vector<2x32xf32>
      %313 = math.exp %312 : vector<2x32xf32>
      %cst_171 = arith.constant 1.000000e+00 : f32
      %314 = vector.broadcast %cst_171 : f32 to vector<2x32xf32>
      %315 = arith.addf %314, %313 : vector<2x32xf32>
      %316 = arith.divf %314, %315 : vector<2x32xf32>
      %317 = vector.extract_strided_slice %304 {offsets = [0, 64], sizes = [2, 32], strides = [1, 1]} : vector<2x128xf32> to vector<2x32xf32>
      %318 = math.tanh %317 : vector<2x32xf32>
      %319 = vector.extract_strided_slice %304 {offsets = [0, 96], sizes = [2, 32], strides = [1, 1]} : vector<2x128xf32> to vector<2x32xf32>
      %320 = arith.negf %319 : vector<2x32xf32>
      %321 = math.exp %320 : vector<2x32xf32>
      %cst_172 = arith.constant 1.000000e+00 : f32
      %322 = vector.broadcast %cst_172 : f32 to vector<2x32xf32>
      %323 = arith.addf %322, %321 : vector<2x32xf32>
      %324 = arith.divf %322, %323 : vector<2x32xf32>
      %325 = arith.mulf %316, %295 : vector<2x32xf32>
      %326 = arith.mulf %310, %318 : vector<2x32xf32>
      %327 = arith.addf %325, %326 : vector<2x32xf32>
      %328 = math.tanh %327 : vector<2x32xf32>
      %329 = arith.mulf %324, %328 : vector<2x32xf32>
      %c0_i32_173 = arith.constant 0 : i32
      %330 = arith.cmpi sgt, %293, %c0_i32_173 : i32
      %331 = arith.select %330, %329, %294 : vector<2x32xf32>
      %332 = arith.select %330, %327, %295 : vector<2x32xf32>
      %c2_i32_174 = arith.constant 2 : i32
      %333 = arith.muli %arg38, %c2_i32_174 : i32
      %c1_i32_175 = arith.constant 1 : i32
      %334 = arith.addi %333, %c1_i32_175 : i32
      %335 = arith.index_cast %334 : i32 to index
      %336 = memref.load %arg2[%335] : memref<8xi32, #tpu.memory_space<smem>>
      %337 = arith.index_cast %336 : i32 to index
      %c0_176 = arith.constant 0 : index
      %c0_177 = arith.constant 0 : index
      %338 = vector.load %arg34[%337, %c0_176, %c0_177] : memref<3x2x128xf32, #tpu.memory_space<vmem>>, vector<1x2x128xf32>
      %339 = vector.shape_cast %338 : vector<1x2x128xf32> to vector<2x128xf32>
      %cst_178 = arith.constant dense<0.000000e+00> : vector<2x128xf32>
      %340 = tpu.matmul %331, %158, %cst_178 {dimension_numbers = #tpu.dot_dimension_numbers<[1], [0], [0], [1], [0, 0, 1, 1], [], []>} : vector<2x32xf32>, vector<32x128xf32>, vector<2x128xf32> -> vector<2x128xf32>
      %341 = arith.addf %339, %340 : vector<2x128xf32>
      %342 = vector.extract_strided_slice %341 {offsets = [0, 0], sizes = [2, 32], strides = [1, 1]} : vector<2x128xf32> to vector<2x32xf32>
      %343 = arith.negf %342 : vector<2x32xf32>
      %344 = math.exp %343 : vector<2x32xf32>
      %cst_179 = arith.constant 1.000000e+00 : f32
      %345 = vector.broadcast %cst_179 : f32 to vector<2x32xf32>
      %346 = arith.addf %345, %344 : vector<2x32xf32>
      %347 = arith.divf %345, %346 : vector<2x32xf32>
      %348 = vector.extract_strided_slice %341 {offsets = [0, 32], sizes = [2, 32], strides = [1, 1]} : vector<2x128xf32> to vector<2x32xf32>
      %349 = arith.negf %348 : vector<2x32xf32>
      %350 = math.exp %349 : vector<2x32xf32>
      %cst_180 = arith.constant 1.000000e+00 : f32
      %351 = vector.broadcast %cst_180 : f32 to vector<2x32xf32>
      %352 = arith.addf %351, %350 : vector<2x32xf32>
      %353 = arith.divf %351, %352 : vector<2x32xf32>
      %354 = vector.extract_strided_slice %341 {offsets = [0, 64], sizes = [2, 32], strides = [1, 1]} : vector<2x128xf32> to vector<2x32xf32>
      %355 = math.tanh %354 : vector<2x32xf32>
      %356 = vector.extract_strided_slice %341 {offsets = [0, 96], sizes = [2, 32], strides = [1, 1]} : vector<2x128xf32> to vector<2x32xf32>
      %357 = arith.negf %356 : vector<2x32xf32>
      %358 = math.exp %357 : vector<2x32xf32>
      %cst_181 = arith.constant 1.000000e+00 : f32
      %359 = vector.broadcast %cst_181 : f32 to vector<2x32xf32>
      %360 = arith.addf %359, %358 : vector<2x32xf32>
      %361 = arith.divf %359, %360 : vector<2x32xf32>
      %362 = arith.mulf %353, %332 : vector<2x32xf32>
      %363 = arith.mulf %347, %355 : vector<2x32xf32>
      %364 = arith.addf %362, %363 : vector<2x32xf32>
      %365 = math.tanh %364 : vector<2x32xf32>
      %366 = arith.mulf %361, %365 : vector<2x32xf32>
      %c1_i32_182 = arith.constant 1 : i32
      %367 = arith.cmpi sgt, %293, %c1_i32_182 : i32
      %368 = arith.select %367, %366, %331 : vector<2x32xf32>
      %c0_i32_183 = arith.constant 0 : i32
      %369 = arith.cmpi sgt, %293, %c0_i32_183 : i32
      %370 = arith.select %369, %368, %166 : vector<2x32xf32>
      %371 = arith.index_cast %arg38 : i32 to index
      %372 = memref.load %arg4[%371] : memref<4xi32, #tpu.memory_space<smem>>
      %373 = arith.index_cast %372 : i32 to index
      %c0_184 = arith.constant 0 : index
      %c0_185 = arith.constant 0 : index
      %374 = vector.load %arg35[%373, %c0_184, %c0_185] : memref<3x2x20xf32, #tpu.memory_space<vmem>>, vector<1x2x20xf32>
      %375 = vector.shape_cast %374 : vector<1x2x20xf32> to vector<2x20xf32>
      %cst_186 = arith.constant dense<0.000000e+00> : vector<2x40xf32>
      %376 = tpu.matmul %291, %167, %cst_186 {dimension_numbers = #tpu.dot_dimension_numbers<[1], [0], [0], [1], [0, 0, 1, 1], [], []>} : vector<2x32xf32>, vector<32x40xf32>, vector<2x40xf32> -> vector<2x40xf32>
      %cst_187 = arith.constant dense<0.000000e+00> : vector<2x40xf32>
      %377 = tpu.matmul %370, %168, %cst_187 {dimension_numbers = #tpu.dot_dimension_numbers<[1], [0], [0], [1], [0, 0, 1, 1], [], []>} : vector<2x32xf32>, vector<32x40xf32>, vector<2x40xf32> -> vector<2x40xf32>
      %378 = arith.addf %376, %377 : vector<2x40xf32>
      %cst_188 = arith.constant dense<0.000000e+00> : vector<2x40xf32>
      %379 = tpu.matmul %375, %169, %cst_188 {dimension_numbers = #tpu.dot_dimension_numbers<[1], [0], [0], [1], [0, 0, 1, 1], [], []>} : vector<2x20xf32>, vector<20x40xf32>, vector<2x40xf32> -> vector<2x40xf32>
      %380 = arith.addf %378, %379 : vector<2x40xf32>
      %381 = vector.broadcast %170 : vector<1x40xf32> to vector<2x40xf32>
      %382 = arith.addf %380, %381 : vector<2x40xf32>
      %cst_189 = arith.constant 0.000000e+00 : f32
      %383 = vector.broadcast %cst_189 : f32 to vector<2x40xf32>
      %384 = arith.cmpf ogt, %382, %383 : vector<2x40xf32>
      %385 = math.exp %382 : vector<2x40xf32>
      %cst_190 = arith.constant 1.000000e+00 : f32
      %386 = vector.broadcast %cst_190 : f32 to vector<2x40xf32>
      %387 = arith.subf %385, %386 : vector<2x40xf32>
      %388 = arith.select %384, %382, %387 : vector<2x40xi1>, vector<2x40xf32>
      %cst_191 = arith.constant dense<0.000000e+00> : vector<2x32xf32>
      %389 = tpu.matmul %388, %171, %cst_191 {dimension_numbers = #tpu.dot_dimension_numbers<[1], [0], [0], [1], [0, 0, 1, 1], [], []>} : vector<2x40xf32>, vector<40x32xf32>, vector<2x32xf32> -> vector<2x32xf32>
      %390 = vector.broadcast %172 : vector<1x32xf32> to vector<2x32xf32>
      %391 = arith.addf %389, %390 : vector<2x32xf32>
      %cst_192 = arith.constant 0.000000e+00 : f32
      %392 = vector.broadcast %cst_192 : f32 to vector<2x32xf32>
      %393 = arith.cmpf ogt, %391, %392 : vector<2x32xf32>
      %394 = math.exp %391 : vector<2x32xf32>
      %cst_193 = arith.constant 1.000000e+00 : f32
      %395 = vector.broadcast %cst_193 : f32 to vector<2x32xf32>
      %396 = arith.subf %394, %395 : vector<2x32xf32>
      %397 = arith.select %393, %391, %396 : vector<2x32xi1>, vector<2x32xf32>
      %cst_194 = arith.constant dense<0.000000e+00> : vector<2x128xf32>
      %398 = tpu.matmul %397, %159, %cst_194 {dimension_numbers = #tpu.dot_dimension_numbers<[1], [0], [0], [1], [0, 0, 1, 1], [], []>} : vector<2x32xf32>, vector<32x128xf32>, vector<2x128xf32> -> vector<2x128xf32>
      %399 = vector.broadcast %160 : vector<1x128xf32> to vector<2x128xf32>
      %400 = arith.addf %398, %399 : vector<2x128xf32>
      %401 = arith.index_cast %arg38 : i32 to index
      %c0_195 = arith.constant 0 : index
      %c0_196 = arith.constant 0 : index
      %402 = vector.load %arg36[%401, %c0_195, %c0_196] : memref<4x2x128xf32, #tpu.memory_space<vmem>>, vector<1x2x128xf32>
      %403 = vector.shape_cast %402 : vector<1x2x128xf32> to vector<2x128xf32>
      %404 = vector.shape_cast %400 : vector<2x128xf32> to vector<1x2x128xf32>
      tpu.vector_store %arg36[%401, %c0_195, %c0_196], %404 {strides = array<i32>} : memref<4x2x128xf32, #tpu.memory_space<vmem>>, vector<1x2x128xf32>,
      %c0_197 = arith.constant 0 : index
      %c0_198 = arith.constant 0 : index
      %405 = vector.load %arg37[%c0_197, %c0_198] : memref<2x32xf32, #tpu.memory_space<vmem>>, vector<2x32xf32>
      tpu.vector_store %arg37[%c0_197, %c0_198], %397 {strides = array<i32>} : memref<2x32xf32, #tpu.memory_space<vmem>>, vector<2x32xf32>,
    }
    %c4_i32_117 = arith.constant 4 : i32
    %c0_118 = arith.constant 0 : index
    %c0_119 = arith.constant 0 : index
    %178 = vector.load %arg37[%c0_118, %c0_119] : memref<2x32xf32, #tpu.memory_space<vmem>>, vector<2x32xf32>
    %c0_120 = arith.constant 0 : index
    %c0_121 = arith.constant 0 : index
    %179 = vector.load %arg27[%c0_120, %c0_121] : memref<32x40xf32, #tpu.memory_space<vmem>>, vector<32x40xf32>
    %cst_122 = arith.constant dense<0.000000e+00> : vector<2x40xf32>
    %180 = tpu.matmul %178, %179, %cst_122 {dimension_numbers = #tpu.dot_dimension_numbers<[1], [0], [0], [1], [0, 0, 1, 1], [], []>} : vector<2x32xf32>, vector<32x40xf32>, vector<2x40xf32> -> vector<2x40xf32>
    %c0_123 = arith.constant 0 : index
    %c0_124 = arith.constant 0 : index
    %181 = vector.load %arg28[%c0_123, %c0_124] : memref<1x40xf32, #tpu.memory_space<vmem>>, vector<1x40xf32>
    %182 = vector.broadcast %181 : vector<1x40xf32> to vector<2x40xf32>
    %183 = arith.addf %180, %182 : vector<2x40xf32>
    %cst_125 = arith.constant 0.000000e+00 : f32
    %184 = vector.broadcast %cst_125 : f32 to vector<2x40xf32>
    %185 = arith.cmpf ogt, %183, %184 : vector<2x40xf32>
    %186 = math.exp %183 : vector<2x40xf32>
    %cst_126 = arith.constant 1.000000e+00 : f32
    %187 = vector.broadcast %cst_126 : f32 to vector<2x40xf32>
    %188 = arith.subf %186, %187 : vector<2x40xf32>
    %189 = arith.select %185, %183, %188 : vector<2x40xi1>, vector<2x40xf32>
    %c0_127 = arith.constant 0 : index
    %c0_128 = arith.constant 0 : index
    %190 = vector.load %arg29[%c0_127, %c0_128] : memref<40x32xf32, #tpu.memory_space<vmem>>, vector<40x32xf32>
    %cst_129 = arith.constant dense<0.000000e+00> : vector<2x32xf32>
    %191 = tpu.matmul %189, %190, %cst_129 {dimension_numbers = #tpu.dot_dimension_numbers<[1], [0], [0], [1], [0, 0, 1, 1], [], []>} : vector<2x40xf32>, vector<40x32xf32>, vector<2x32xf32> -> vector<2x32xf32>
    %c0_130 = arith.constant 0 : index
    %c0_131 = arith.constant 0 : index
    %192 = vector.load %arg30[%c0_130, %c0_131] : memref<1x32xf32, #tpu.memory_space<vmem>>, vector<1x32xf32>
    %193 = vector.broadcast %192 : vector<1x32xf32> to vector<2x32xf32>
    %194 = arith.addf %191, %193 : vector<2x32xf32>
    %cst_132 = arith.constant 0.000000e+00 : f32
    %195 = vector.broadcast %cst_132 : f32 to vector<2x32xf32>
    %196 = arith.cmpf ogt, %194, %195 : vector<2x32xf32>
    %197 = math.exp %194 : vector<2x32xf32>
    %cst_133 = arith.constant 1.000000e+00 : f32
    %198 = vector.broadcast %cst_133 : f32 to vector<2x32xf32>
    %199 = arith.subf %197, %198 : vector<2x32xf32>
    %200 = arith.select %196, %194, %199 : vector<2x32xi1>, vector<2x32xf32>
    %c0_134 = arith.constant 0 : index
    %c0_135 = arith.constant 0 : index
    %201 = vector.load %arg31[%c0_134, %c0_135] : memref<32x1xf32, #tpu.memory_space<vmem>>, vector<32x1xf32>
    %cst_136 = arith.constant dense<0.000000e+00> : vector<2x1xf32>
    %202 = tpu.matmul %200, %201, %cst_136 {dimension_numbers = #tpu.dot_dimension_numbers<[1], [0], [0], [1], [0, 0, 1, 1], [], []>} : vector<2x32xf32>, vector<32x1xf32>, vector<2x1xf32> -> vector<2x1xf32>
    %c0_137 = arith.constant 0 : index
    %c0_138 = arith.constant 0 : index
    %203 = vector.load %arg32[%c0_137, %c0_138] : memref<1x1xf32, #tpu.memory_space<vmem>>, vector<1x1xf32>
    %204 = vector.broadcast %203 : vector<1x1xf32> to vector<2x1xf32>
    %205 = arith.addf %202, %204 : vector<2x1xf32>
    %cst_139 = arith.constant 0.000000e+00 : f32
    %206 = vector.broadcast %cst_139 : f32 to vector<2x1xf32>
    %207 = arith.cmpf ogt, %205, %206 : vector<2x1xf32>
    %208 = math.exp %205 : vector<2x1xf32>
    %cst_140 = arith.constant 1.000000e+00 : f32
    %209 = vector.broadcast %cst_140 : f32 to vector<2x1xf32>
    %210 = arith.subf %208, %209 : vector<2x1xf32>
    %211 = arith.select %207, %205, %210 : vector<2x1xi1>, vector<2x1xf32>
    %c0_141 = arith.constant 0 : index
    %c0_142 = arith.constant 0 : index
    %212 = vector.load %arg33[%c0_141, %c0_142] : memref<2x1xf32, #tpu.memory_space<vmem>>, vector<2x1xf32>
    tpu.vector_store %arg33[%c0_141, %c0_142], %211 {strides = array<i32>} : memref<2x1xf32, #tpu.memory_space<vmem>>, vector<2x1xf32>,
    return
  }
}

</mosaic_0001>

<bundles_post_ra>
// kernel: forward.1
= control target key start
LH: loop header
LB: loop body
LE: loop exit
PB: predicated region body
PF: predicated region fallthrough
CT: control target
= control target key end

     0   :  { %s3458_s6 = smov 1   ;;  %s3459_s10 = smov 2   ;;  %s4339_s0 = inlined_call_operand.smem [shape: u32[34], index: -1, kind: input, shape index: {}] }
   0x1   :  { %s3511_s5 = sld [smem:[%s4339_s0]]   ;;  %s3460_s14 = smov 3  }
   0x2   :  { %s3516_s9 = sld [smem:[%s4339_s0 + %s3458_s6]]   ;;  %s3461_s18 = smov 4  }
   0x3   :  { %s3521_s13 = sld [smem:[%s4339_s0 + %s3459_s10]]   ;;  %s3462_s22 = smov 5  }
   0x4   :  { %s3526_s17 = sld [smem:[%s4339_s0 + %s3460_s14]]   ;;  %s3463_s26 = smov 6  }
   0x5   :  { %s3531_s21 = sld [smem:[%s4339_s0 + %s3461_s18]]   ;;  %s3464_s30 = smov 7  }
   0x6   :  { %s3536_s25 = sld [smem:[%s4339_s0 + %s3462_s22]]   ;;  %s3465_s4 = smov 8  }
   0x7   :  { %s3541_s29 = sld [smem:[%s4339_s0 + %s3463_s26]]   ;;  %s3466_s10 = smov 9  }
   0x8   :  { %s3546_s3 = sld [smem:[%s4339_s0 + %s3464_s30]]   ;;  %s3467_s15 = smov 10  }
   0x9   :  { %s3551_s8 = sld [smem:[%s4339_s0 + %s3465_s4]]   ;;  %s3468_s20 = smov 11  }
   0xa   :  { %s3556_s14 = sld [smem:[%s4339_s0 + %s3466_s10]]   ;;  %s3469_s26 = smov 12  }
   0xb   :  { %s3561_s19 = sld [smem:[%s4339_s0 + %s3467_s15]]   ;;  %s3470_s1 = smov 13  }
   0xc   :  { %s3566_s24 = sld [smem:[%s4339_s0 + %s3468_s20]]   ;;  %s3471_s7 = smov 14  }
   0xd   :  { %s3571_s30 = sld [smem:[%s4339_s0 + %s3469_s26]]   ;;  %s3472_s15 = smov 15  }
   0xe   :  { %s3576_s6 = sld [smem:[%s4339_s0 + %s3470_s1]]   ;;  %s3473_s22 = smov 16  }
   0xf   :  { %s3581_s12 = sld [smem:[%s4339_s0 + %s3471_s7]]   ;;  %s3474_s28 = smov 17  }
  0x10   :  { %s3586_s20 = sld [smem:[%s4339_s0 + %s3472_s15]]   ;;  %s3475_s7 = smov 18  }
  0x11   :  { %s3591_s27 = sld [smem:[%s4339_s0 + %s3473_s22]]   ;;  %s3476_s15 = smov 19  }
  0x12   :  { %s3596_s4 = sld [smem:[%s4339_s0 + %s3474_s28]]   ;;  %s3477_s22 = smov 20  }
  0x13   :  { %s3478_s28 = smov 21   ;;  %s3490_s1 = smov 33  }
  0x15   :  { %4348 = sst [smem:[#allocation18_spill]] %s3581_s12 }
  0x16   :  { %4349 = sst [smem:[#allocation19_spill]] %s3586_s20 }
  0x17   :  { %4350 = sst [smem:[#allocation20_spill]] %s3591_s27 }
  0x18   :  { %4351 = sst [smem:[#allocation21_spill]] %s3596_s4 }
  0x19   :  { %s3601_s12 = sld [smem:[%s4339_s0 + %s3475_s7]]   ;;  %s3479_s7 = smov 22  }
  0x1a   :  { %s3606_s20 = sld [smem:[%s4339_s0 + %s3476_s15]]   ;;  %s3480_s15 = smov 23  }
  0x1b   :  { %s3611_s27 = sld [smem:[%s4339_s0 + %s3477_s22]]   ;;  %s3481_s22 = smov 24  }
  0x1c   :  { %s3616_s4 = sld [smem:[%s4339_s0 + %s3478_s28]]   ;;  %s3482_s28 = smov 25  }
  0x1f   :  { %4352 = sst [smem:[#allocation22_spill]] %s3601_s12 }
  0x20   :  { %4353 = sst [smem:[#allocation23_spill]] %s3606_s20 }
  0x21   :  { %4354 = sst [smem:[#allocation24_spill]] %s3611_s27 }
  0x22   :  { %4355 = sst [smem:[#allocation25_spill]] %s3616_s4 }
  0x23   :  { %s3621_s12 = sld [smem:[%s4339_s0 + %s3479_s7]]   ;;  %s3483_s7 = smov 26  }
  0x24   :  { %s3626_s20 = sld [smem:[%s4339_s0 + %s3480_s15]]   ;;  %s3484_s15 = smov 27  }
  0x25   :  { %s3631_s27 = sld [smem:[%s4339_s0 + %s3481_s22]]   ;;  %s3485_s22 = smov 28  }
  0x26   :  { %s3636_s4 = sld [smem:[%s4339_s0 + %s3482_s28]]   ;;  %s3486_s28 = smov 29  }
  0x29   :  { %4356 = sst [smem:[#allocation26_spill]] %s3621_s12 }
  0x2a   :  { %4357 = sst [smem:[#allocation27_spill]] %s3626_s20 }
  0x2b   :  { %4358 = sst [smem:[#allocation28_spill]] %s3631_s27 }
  0x2c   :  { %4359 = sst [smem:[#allocation29_spill]] %s3636_s4 }
  0x2d   :  { %s3641_s12 = sld [smem:[%s4339_s0 + %s3483_s7]]   ;;  %s3487_s7 = smov 30  }
  0x2e   :  { %s3646_s20 = sld [smem:[%s4339_s0 + %s3484_s15]]   ;;  %s3488_s15 = smov 31  }
  0x2f   :  { %s3651_s27 = sld [smem:[%s4339_s0 + %s3485_s22]]   ;;  %s3489_s22 = smov 32  }
  0x30   :  { %s3656_s4 = sld [smem:[%s4339_s0 + %s3486_s28]]  }
  0x33   :  { %4360 = sst [smem:[#allocation30_spill]] %s3641_s12 }
  0x34   :  { %4361 = sst [smem:[#allocation31_spill]] %s3646_s20 }
  0x35   :  { %4362 = sst [smem:[#allocation32_spill]] %s3651_s27 }
  0x36   :  { %4363 = sst [smem:[#allocation33_spill]] %s3656_s4 }
  0x37   :  { %s3661_s12 = sld [smem:[%s4339_s0 + %s3487_s7]]  }
  0x38   :  { %s3666_s20 = sld [smem:[%s4339_s0 + %s3488_s15]]  }
  0x39   :  { %s2699_s27 = sld [smem:[%s4339_s0 + %s3489_s22]]  }
  0x3a   :  { %s3674_s4 = sld [smem:[%s4339_s0 + %s3490_s1]]  }
  0x3f   :  { %v72_v0 = vstv %s2699_s27 }
  0x40   :  { %73 = vst [vmem:[#allocation6] sm:$0x1] %v72_v0 }
  0x41   :  { %74 = vsyncpa [#allocation8], 0 }
  0x42   :  { %75 = vsyncpa [#allocation10], 0  ;;  %s93_s7 = sshll.u32 %s3516_s9, 4  ;;  %s94_s7 = int_to_ptr.vmem [resolvable:$true] %s93_s7 }
  0x43   :  { %76 = vsyncpa [#allocation13], 0  ;;  %s113_s10 = sshll.u32 %s3526_s17, 4  ;;  %s3384_s11 = scalar_lea.vmem %s94_s7, 16  ;;  %s114_s10 = int_to_ptr.vmem [resolvable:$true] %s113_s10 }
  0x44   :  { %p3385_p0 = scmp.ne.s32.totalorder %s94_s7, %s3384_s11  ;;  %p3389_p1 = scmp.lt.s32.totalorder %s94_s7, %s94_s7 }
  0x45   :  { %p3390_p2 = scmp.lt.s32.totalorder %s3384_s11, %s3384_s11 }
  0x47   :  { %p3391_p3 = por %p3390_p2, %p3389_p1 }
  0x49   :  { %p3392_p4 = pnand %p3391_p3, %p3385_p0 }
  0x4b   :  { %3395 = shalt.err (!%p3392_p4)
}
  0x4c   :  { %s3491_s15 = smov [#allocation9]   ;;  %s3396_s0 = scalar_lea.vmem %s114_s10, 16 }
  0x4d   :  { %96 = dma.vmem_to_smem %s94_s7, 16, %s3491_s15, [#allocation10]  }
  0x4e   :  { %p3397_p5 = scmp.ne.s32.totalorder %s114_s10, %s3396_s0  ;;  %p3401_p6 = scmp.lt.s32.totalorder %s114_s10, %s114_s10 }
  0x4f   :  { %p3402_p7 = scmp.lt.s32.totalorder %s3396_s0, %s3396_s0 }
  0x51   :  { %p3403_p8 = por %p3402_p7, %p3401_p6 }
  0x53   :  { %p3404_p9 = pnand %p3403_p8, %p3397_p5 }
  0x55   :  { %3407 = shalt.err (!%p3404_p9)
}
  0x56   :  { %s3492_s9 = smov [#allocation12]   ;;  %s83_s17 = sshll.u32 %s3511_s5, 4  ;;  %s84_s17 = int_to_ptr.vmem [resolvable:$true] %s83_s17 }
  0x57   :  { %116 = dma.vmem_to_smem %s114_s10, 16, %s3492_s9, [#allocation13]  }
  0x58   :  { %s103_s27 = sshll.u32 %s3521_s13, 4  ;;  %s3408_s16 = scalar_lea.vmem %s84_s17, 16  ;;  %s104_s27 = int_to_ptr.vmem [resolvable:$true] %s103_s27 }
  0x59   :  { %p3409_p10 = scmp.ne.s32.totalorder %s84_s17, %s3408_s16  ;;  %p3413_p11 = scmp.lt.s32.totalorder %s84_s17, %s84_s17 }
  0x5a   :  { %p3414_p12 = scmp.lt.s32.totalorder %s3408_s16, %s3408_s16 }
  0x5c   :  { %p3415_p13 = por %p3414_p12, %p3413_p11 }
  0x5e   :  { %p3416_p0 = pnand %p3415_p13, %p3409_p10 }
  0x60   :  { %3419 = shalt.err (!%p3416_p0)
}
  0x61   :  { %s3493_s18 = smov [#allocation7]   ;;  %s3420_s22 = scalar_lea.vmem %s104_s27, 16 }
  0x62   :  { %86 = dma.vmem_to_smem %s84_s17, 16, %s3493_s18, [#allocation8]  }
  0x63   :  { %p3421_p1 = scmp.ne.s32.totalorder %s104_s27, %s3420_s22  ;;  %p3425_p2 = scmp.lt.s32.totalorder %s104_s27, %s104_s27 }
  0x64   :  { %p3426_p3 = scmp.lt.s32.totalorder %s3420_s22, %s3420_s22 }
  0x66   :  { %p3427_p4 = por %p3426_p3, %p3425_p2 }
  0x68   :  { %p3428_p5 = pnand %p3427_p4, %p3421_p1 }
  0x6a   :  { %3431 = shalt.err (!%p3428_p5)
}
  0x6b   :  { %s3494_s5 = smov [#allocation11]   ;;  %s123_s13 = sshll.u32 %s3531_s21, 4  ;;  %s124_s13 = int_to_ptr.vmem [resolvable:$true] %s123_s13 }
  0x6c   :  { %106 = dma.vmem_to_smem %s104_s27, 16, %s3494_s5, [#allocation10]  }
  0x6d   :  { %s3432_s23 = scalar_lea.vmem %s124_s13, 16  ;;  %p3437_p7 = scmp.lt.s32.totalorder %s124_s13, %s124_s13 }
  0x6e   :  { %p3433_p6 = scmp.ne.s32.totalorder %s124_s13, %s3432_s23  ;;  %p3438_p8 = scmp.lt.s32.totalorder %s3432_s23, %s3432_s23 }
  0x70   :  { %p3439_p9 = por %p3438_p8, %p3437_p7 }
  0x72   :  { %p3440_p10 = pnand %p3439_p9, %p3433_p6 }
  0x74   :  { %3443 = shalt.err (!%p3440_p10)
}
  0x75   :  { %s3495_s26 = smov [#allocation14]  }
  0x76   :  { %126 = dma.vmem_to_smem %s124_s13, 16, %s3495_s26, [#allocation13]  }
  0x77   :  { %3448 = dma.done.wait [#allocation8], 16  }
  0x78   :  { %3449 = vsyncadd [#allocation8], 4294967280 }
  0x79   :  { %3450 = dma.done.wait [#allocation10], 32  }
  0x7a   :  { %3451 = vsyncadd [#allocation10], 4294967264 }
  0x7b   :  { %3452 = dma.done.wait [#allocation13], 32  }
  0x7c   :  { %3453 = vsyncadd [#allocation13], 4294967264 }
  0x7d   :  { %198 = sfence }
  0x7e   :  { %v3682_v1 = vld [vmem:[%s3546_s3 + $0x18] sm:$0xff]  ;;  %v3685_v2 = vld [vmem:[%s3546_s3 + $0x10] sm:$0xff]  ;;  %v3496_v3 = vmov 0.0   ;;  %v3690_v4 = vld [vmem:[%s3546_s3 + $0x8] sm:$0xff]  ;;  %vm3497_vm0 = vmmov 0   ;;  %vm242_vm1 = vcmask 1041409  }
  0x7f   :  { %2924 = vmatprep.subr.mxu0 %v3496_v3  ;;  %1511 = vst [vmem:[#allocation4] sm:$0x3] %v3496_v3  ;;  %2932 = vmatprep.mubr.msk.f32.mxu0 %vm3497_vm0, %v3496_v3  ;;  %v231_v5 = vld [vmem:[%s3536_s25] sm:$0x1]  ;;  %v232_v6 = vld [vmem:[%s3536_s25 + $0x4] sm:$0x1] }
  0x80   :  { %2925 = vmatpush3.msra.mxu0 %v3682_v1  ;;  %v241_v7 = vrot.slane %v232_v6, 7  ;;  %v1441_v8 = vld [vmem:[%s3541_s29] sm:$0x1]  ;;  %v1442_v9 = vld [vmem:[%s3541_s29 + $0x4] sm:$0x1]  ;;  %2935 = vmatprep.subr.mxu1 %v3496_v3  ;;  %vm1448_vm2 = vcmask 156672  }
  0x81   :  { %2926 = vmatprep.subr.mxu0 %v3496_v3  ;;  %v1445_v10 = vrot.slane %v1442_v9, 7  ;;  %v1450_v11 = vld [vmem:[%s3541_s29 + $0x1] sm:$0x1]  ;;  %v1451_v12 = vld [vmem:[%s3541_s29 + $0x5] sm:$0x1]  ;;  %2951 = vmatprep.mubr.msk.f32.mxu1 %vm3497_vm0, %v3496_v3  ;;  %vm244_vm3 = vcmask 261120  }
  0x82   :  { %2927 = vmatpush3.msra.mxu0 %v3685_v2  ;;  %v1454_v13 = vrot.slane %v1451_v12, 7  ;;  %v1459_v14 = vld [vmem:[%s3541_s29 + $0x2] sm:$0x1]  ;;  %v1460_v15 = vld [vmem:[%s3541_s29 + $0x6] sm:$0x1]  ;;  %v243_v19 = vsel %vm242_vm1, %v241_v7, %v231_v5  ;;  %v3727_v22 = vld [vmem:[%s3556_s14 + $0x38] sm:$0xff] }
  0x83   :  { %2928 = vmatprep.subr.mxu0 %v3496_v3  ;;  %v3710_v16 = vld [vmem:[%s3546_s3] sm:$0xff]  ;;  %v1446_v17 = vsel %vm242_vm1, %v1445_v10, %v1441_v8  ;;  %v1463_v18 = vrot.slane %v1460_v15, 7  ;;  %v3730_v23 = vld [vmem:[%s3556_s14 + $0x30] sm:$0xff]  ;;  %2936 = vmatpush3.msra.mxu1 %v3727_v22  ;;  %v3735_v24 = vld [vmem:[%s3556_s14 + $0x28] sm:$0xff]  ;;  %vm328_vm4 = vcmask 523264   ;;  %vm413_vm6 = vcmask 392192  }
  0x84   :  { %2929 = vmatpush3.msra.mxu0 %v3690_v4  ;;  %1449 = vst.msk [vmem:[#allocation3] sm:$0x3] %vm1448_vm2, %v1446_v17  ;;  %v1455_v20 = vsel %vm242_vm1, %v1454_v13, %v1450_v11  ;;  %2937 = vmatprep.subr.mxu1 %v3496_v3  ;;  %v3740_v25 = vld [vmem:[%s3556_s14 + $0x20] sm:$0xff]  ;;  %v3745_v26 = vld [vmem:[%s3556_s14 + $0x18] sm:$0xff]  ;;  %v3750_v27 = vld [vmem:[%s3556_s14 + $0x10] sm:$0xff]  ;;  %vm498_vm8 = vcmask 326656  }
  0x85   :  { %2930 = vmatprep.subr.mxu0 %v3496_v3  ;;  %1458 = vst.msk [vmem:[#allocation3 + $0x2] sm:$0x3] %vm1448_vm2, %v1455_v20  ;;  %v1464_v21 = vsel %vm242_vm1, %v1463_v18, %v1459_v14  ;;  %2938 = vmatpush3.msra.mxu1 %v3730_v23  ;;  %v3755_v28 = vld [vmem:[%s3556_s14 + $0x8] sm:$0xff]  ;;  %v3760_v29 = vld [vmem:[%s3556_s14] sm:$0xff]  ;;  %v3784_v40 = vld [vmem:[%s3566_s24 + $0x18] sm:$0xff]  ;;  %s4364_s21 = sld [smem:[#allocation19_spill]] }
  0x86   :  { %2931 = vmatpush3.msra.mxu0 %v3710_v16  ;;  %1467 = vst.msk [vmem:[#allocation3 + $0x4] sm:$0x3] %vm1448_vm2, %v1464_v21  ;;  %2939 = vmatprep.subr.mxu1 %v3496_v3  ;;  %v3767_v30 = vld [vmem:[%s3551_s8] ss:$0 sm:$0xff]  ;;  %v3774_v38 = vld [vmem:[%s3566_s24 + $0x28] sm:$0xff]  ;;  %v3789_v41 = vld [vmem:[%s3566_s24 + $0x10] sm:$0xff] }
  0x87   :  { %2933 = vmatmul.mubr.msk.f32.vlgmr.msra.gmra.mxu0 %vm244_vm3, %v243_v19  ;;  %2954 = vmatprep.subr.mxu0 %v3496_v3  ;;  %v3779_v39 = vld [vmem:[%s3566_s24 + $0x20] sm:$0xff]  ;;  %v3794_v42 = vld [vmem:[%s3566_s24 + $0x8] sm:$0xff]  ;;  %v3816_v53 = vld [vmem:[%s3576_s6 + $0x18] sm:$0xff]  ;;  %s4365_s29 = sld [smem:[#allocation18_spill]]  ;;  %s4120_s7 = smov 0  }
  0x88   :  { %2966 = vmatprep.mubr.msk.f32.mxu0 %vm3497_vm0, %v3496_v3  ;;  %2940 = vmatpush3.msra.mxu1 %v3735_v24  ;;  %v3799_v43 = vld [vmem:[%s3566_s24] sm:$0xff]  ;;  %v3821_v54 = vld [vmem:[%s3576_s6 + $0x10] sm:$0xff]  ;;  %v3826_v55 = vld [vmem:[%s3576_s6 + $0x8] sm:$0xff]  ;;  %s4366_s3 = sld [smem:[#allocation21_spill]] }
  0x89   :  { %2941 = vmatprep.subr.mxu1 %v3496_v3  ;;  %2955 = vmatpush3.msra.mxu0 %v3774_v38  ;;  %v3804_v44 = vld [vmem:[%s3561_s19] ss:$0 sm:$0xff]  ;;  %v658_v0 = vld [vmem:[%s3536_s25 + $0x5] sm:$0x1]  ;;  %v657_v7 = vld [vmem:[%s3536_s25 + $0x1] sm:$0x1] }
  0x8a   :  { %2942 = vmatpush3.msra.mxu1 %v3740_v25  ;;  %2956 = vmatprep.subr.mxu0 %v3496_v3  ;;  %v3811_v52 = vld [vmem:[%s3576_s6 + $0x20] sm:$0xff]  ;;  %v661_v6 = vrot.slane %v658_v0, 7  ;;  %s4368_s8 = sld [smem:[#allocation20_spill]] }
  0x8b   :  { %2943 = vmatprep.subr.mxu1 %v3496_v3  ;;  %2957 = vmatpush3.msra.mxu0 %v3779_v39  ;;  %v3831_v56 = vld [vmem:[%s3576_s6] sm:$0xff]  ;;  %v3869_v9 = vld [vmem:[%s4364_s21 + $0x18] sm:$0xff]  ;;  %v3874_v10 = vld [vmem:[%s4364_s21 + $0x10] sm:$0xff]  ;;  %s4369_s14 = sld [smem:[#allocation22_spill]] }
  0x8c   :  { %2944 = vmatpush3.msra.mxu1 %v3745_v26  ;;  %2958 = vmatprep.subr.mxu0 %v3496_v3  ;;  %v3836_v57 = vld [vmem:[%s3571_s30] ss:$0 sm:$0xff]  ;;  %v662_v8 = vsel %vm242_vm1, %v661_v6, %v657_v7  ;;  %v3879_v11 = vld [vmem:[%s4364_s21 + $0x8] sm:$0xff]  ;;  %s4370_s19 = sld [smem:[#allocation24_spill]] }
  0x8d   :  { %2945 = vmatprep.subr.mxu1 %v3496_v3  ;;  %2959 = vmatpush3.msra.mxu0 %v3784_v40  ;;  %v3884_v12 = vld [vmem:[%s4364_s21] sm:$0xff]  ;;  %s4371_s24 = sld [smem:[#allocation25_spill]] }
  0x8e   :  { %2946 = vmatpush3.msra.mxu1 %v3750_v27  ;;  %2960 = vmatprep.subr.mxu0 %v3496_v3  ;;  %v3889_v13 = vld [vmem:[%s4365_s29] ss:$0 sm:$0xff]  ;;  %s4372_s30 = sld [smem:[#allocation26_spill]] }
  0x8f   :  { %2947 = vmatprep.subr.mxu1 %v3496_v3  ;;  %2961 = vmatpush3.msra.mxu0 %v3789_v41  ;;  %s4373_s6 = sld [smem:[#allocation27_spill]] }
  0x90   :  { %2948 = vmatpush3.msra.mxu1 %v3755_v28  ;;  %2962 = vmatprep.subr.mxu0 %v3496_v3  ;;  %s4374_s1 = sld [smem:[#allocation28_spill]] }
  0x91   :  { %2949 = vmatprep.subr.mxu1 %v3496_v3  ;;  %2963 = vmatpush3.msra.mxu0 %v3794_v42  ;;  %s4375_s28 = sld [smem:[#allocation29_spill]] }
  0x92   :  { %2950 = vmatpush3.msra.mxu1 %v3760_v29  ;;  %2964 = vmatprep.subr.mxu0 %v3496_v3  ;;  %s4376_s2 = sld [smem:[#allocation30_spill]] }
  0x93   :  { %2969 = vmatprep.subr.mxu1 %v3496_v3  ;;  %2965 = vmatpush3.msra.mxu0 %v3799_v43 }
  0x94   :  { %2982 = vmatprep.subr.mxu0 %v3496_v3 }
 0x147   :  { %v313_v31 = vpop.f32.mrf.mxu0 }
 0x148   :  { %v314_v32 = vadd.f32 %v3767_v30, %v313_v31 }
 0x149   :  { %v2934_v33 = vpop.f32.mrf.mxu0 }
 0x14a   :  { %v318_v34 = vmul.f32 1.442695, %v314_v32  ;;  %vm317_vm5 = vcmp.gt.f32.partialorder %v314_v32, 0.0 }
 0x14c   :  { %3318 = vpow2.f32 %v318_v34 }
 0x159   :  { %v3319_v35 = vpop.eup %3318 }
 0x15a   :  { %v2703_v36 = vadd.f32 -1.0, %v3319_v35 }
 0x15c   :  { %v321_v37 = vsel %vm317_vm5, %v314_v32, %v2703_v36 }
 0x15d   :  { %2952 = vmatmul.mubr.msk.f32.vlgmr.msra.gmra.mxu1 %vm328_vm4, %v321_v37 }
 0x15e   :  { %2979 = vmatprep.mubr.msk.f32.mxu1 %vm3497_vm0, %v3496_v3  ;;  %2970 = vmatpush3.msra.mxu1 %v3811_v52 }
 0x15f   :  { %2971 = vmatprep.subr.mxu1 %v3496_v3 }
 0x160   :  { %2972 = vmatpush3.msra.mxu1 %v3816_v53 }
 0x161   :  { %2973 = vmatprep.subr.mxu1 %v3496_v3 }
 0x162   :  { %2974 = vmatpush3.msra.mxu1 %v3821_v54 }
 0x163   :  { %2975 = vmatprep.subr.mxu1 %v3496_v3 }
 0x164   :  { %2976 = vmatpush3.msra.mxu1 %v3826_v55 }
 0x165   :  { %2977 = vmatprep.subr.mxu1 %v3496_v3 }
 0x166   :  { %2978 = vmatpush3.msra.mxu1 %v3831_v56 }
 0x167   :  { %2993 = vmatprep.subr.mxu1 %v3496_v3 }
 0x21d   :  { %v398_v45 = vpop.f32.mrf.mxu1 }
 0x21e   :  { %v399_v46 = vadd.f32 %v3804_v44, %v398_v45  ;;  %v3926_v45 = vld [vmem:[%s4366_s3] ss:$0 sm:$0xff] }
 0x21f   :  { %v2953_v47 = vpop.f32.mrf.mxu1 }
 0x220   :  { %v403_v48 = vmul.f32 1.442695, %v399_v46  ;;  %vm402_vm7 = vcmp.gt.f32.partialorder %v399_v46, 0.0 }
 0x222   :  { %3320 = vpow2.f32 %v403_v48 }
 0x22f   :  { %v3321_v49 = vpop.eup %3320 }
 0x230   :  { %v2706_v50 = vadd.f32 -1.0, %v3321_v49 }
 0x232   :  { %v406_v51 = vsel %vm402_vm7, %v399_v46, %v2706_v50 }
 0x233   :  { %2967 = vmatmul.mubr.msk.f32.vlgmr.msra.gmra.mxu0 %vm413_vm6, %v406_v51 }
 0x234   :  { %2990 = vmatprep.mubr.msk.f32.mxu0 %vm3497_vm0, %v3496_v3  ;;  %2983 = vmatpush3.msra.mxu0 %v3869_v9 }
 0x235   :  { %2984 = vmatprep.subr.mxu0 %v3496_v3 }
 0x236   :  { %2985 = vmatpush3.msra.mxu0 %v3874_v10 }
 0x237   :  { %2986 = vmatprep.subr.mxu0 %v3496_v3 }
 0x238   :  { %2987 = vmatpush3.msra.mxu0 %v3879_v11 }
 0x239   :  { %2988 = vmatprep.subr.mxu0 %v3496_v3 }
 0x23a   :  { %2989 = vmatpush3.msra.mxu0 %v3884_v12 }
 0x23b   :  { %3004 = vmatprep.subr.mxu0 %v3496_v3 }
 0x2f3   :  { %v483_v58 = vpop.f32.mrf.mxu0 }
 0x2f4   :  { %v484_v59 = vadd.f32 %v3836_v57, %v483_v58 }
 0x2f5   :  { %v2968_v60 = vpop.f32.mrf.mxu0 }
 0x2f6   :  { %v488_v61 = vmul.f32 1.442695, %v484_v59  ;;  %vm487_vm9 = vcmp.gt.f32.partialorder %v484_v59, 0.0 }
 0x2f8   :  { %3322 = vpow2.f32 %v488_v61 }
 0x305   :  { %v3323_v62 = vpop.eup %3322 }
 0x306   :  { %v2709_v63 = vadd.f32 -1.0, %v3323_v62 }
 0x308   :  { %v491_v5 = vsel %vm487_vm9, %v484_v59, %v2709_v63 }
 0x309   :  { %2980 = vmatmul.mubr.msk.f32.vlgmr.msra.gmra.mxu1 %vm498_vm8, %v491_v5 }
 0x30a   :  { %2994 = vmatpush3.msra.mxu1 %v3682_v1  ;;  %3001 = vmatprep.mubr.msk.f32.mxu1 %vm3497_vm0, %v3496_v3 }
 0x30b   :  { %2995 = vmatprep.subr.mxu1 %v3496_v3 }
 0x30c   :  { %2996 = vmatpush3.msra.mxu1 %v3685_v2 }
 0x30d   :  { %2997 = vmatprep.subr.mxu1 %v3496_v3 }
 0x30e   :  { %2998 = vmatpush3.msra.mxu1 %v3690_v4 }
 0x30f   :  { %2999 = vmatprep.subr.mxu1 %v3496_v3 }
 0x310   :  { %3000 = vmatpush3.msra.mxu1 %v3710_v16 }
 0x311   :  { %3002 = vmatmul.mubr.msk.f32.vlgmr.msra.gmra.mxu1 %vm244_vm3, %v662_v8  ;;  %3023 = vmatprep.subr.mxu1 %v3496_v3  ;;  %v1050_v8 = vld [vmem:[%s3536_s25 + $0x6] sm:$0x1] }
 0x312   :  { %3024 = vmatpush3.msra.mxu1 %v3774_v38  ;;  %3035 = vmatprep.mubr.msk.f32.mxu1 %vm3497_vm0, %v3496_v3 }
 0x313   :  { %3025 = vmatprep.subr.mxu1 %v3496_v3 }
 0x314   :  { %3026 = vmatpush3.msra.mxu1 %v3779_v39 }
 0x315   :  { %3027 = vmatprep.subr.mxu1 %v3496_v3 }
 0x316   :  { %3028 = vmatpush3.msra.mxu1 %v3784_v40 }
 0x317   :  { %3029 = vmatprep.subr.mxu1 %v3496_v3 }
 0x318   :  { %3030 = vmatpush3.msra.mxu1 %v3789_v41 }
 0x319   :  { %3031 = vmatprep.subr.mxu1 %v3496_v3 }
 0x31a   :  { %3032 = vmatpush3.msra.mxu1 %v3794_v42 }
 0x31b   :  { %3033 = vmatprep.subr.mxu1 %v3496_v3 }
 0x31c   :  { %3034 = vmatpush3.msra.mxu1 %v3799_v43 }
 0x31d   :  { %3051 = vmatprep.subr.mxu1 %v3496_v3 }
 0x3c9   :  { %v568_v14 = vpop.f32.mrf.mxu1 }
 0x3ca   :  { %v569_v15 = vadd.f32 %v3889_v13, %v568_v14 }
 0x3cb   :  { %v2981_v17 = vpop.f32.mrf.mxu1 }
 0x3cc   :  { %v573_v18 = vmul.f32 1.442695, %v569_v15  ;;  %vm572_vm10 = vcmp.gt.f32.partialorder %v569_v15, 0.0  ;;  %v1049_v17 = vld [vmem:[%s3536_s25 + $0x2] sm:$0x1]  ;;  %s4367_s25 = sld [smem:[#allocation23_spill]] }
 0x3ce   :  { %3324 = vpow2.f32 %v573_v18 }
 0x3d1   :  { %v731_v19 = vpop.f32.mrf.mxu1 }
 0x3d2   :  { %v732_v20 = vadd.f32 %v3767_v30, %v731_v19 }
 0x3d3   :  { %v3003_v21 = vpop.f32.mrf.mxu1 }
 0x3d4   :  { %v736_v31 = vmul.f32 1.442695, %v732_v20  ;;  %vm735_vm11 = vcmp.gt.f32.partialorder %v732_v20, 0.0 }
 0x3d6   :  { %3326 = vpow2.f32 %v736_v31 }
 0x3db   :  { %v3325_v32 = vpop.eup %3324 }
 0x3dc   :  { %v2712_v33 = vadd.f32 -1.0, %v3325_v32 }
 0x3de   :  { %v576_v34 = vsel %vm572_vm10, %v569_v15, %v2712_v33  ;;  %v1053_v15 = vrot.slane %v1050_v8, 7  ;;  %v4078_v8 = vld [vmem:[%s4373_s6 + $0x20] sm:$0xff] }
 0x3df   :  { %2991 = vmatmul.mubr.msk.f32.vlgmr.msra.gmra.mxu0 %vm244_vm3, %v576_v34 }
 0x3e0   :  { %3005 = vmatpush3.msra.mxu0 %v3727_v22  ;;  %3020 = vmatprep.mubr.msk.f32.mxu0 %vm3497_vm0, %v3496_v3  ;;  %v1054_v18 = vsel %vm242_vm1, %v1053_v15, %v1049_v17  ;;  %v4084_v15 = vld [vmem:[%s4373_s6 + $0x30] sm:$0xff]  ;;  %v4087_v17 = vld [vmem:[%s4373_s6 + $0x38] sm:$0xff] }
 0x3e1   :  { %3006 = vmatprep.subr.mxu0 %v3496_v3 }
 0x3e2   :  { %3007 = vmatpush3.msra.mxu0 %v3730_v23 }
 0x3e3   :  { %3008 = vmatprep.subr.mxu0 %v3496_v3  ;;  %v3327_v35 = vpop.eup %3326 }
 0x3e4   :  { %3009 = vmatpush3.msra.mxu0 %v3735_v24  ;;  %v2716_v36 = vadd.f32 -1.0, %v3327_v35 }
 0x3e5   :  { %3010 = vmatprep.subr.mxu0 %v3496_v3 }
 0x3e6   :  { %3011 = vmatpush3.msra.mxu0 %v3740_v25  ;;  %v739_v37 = vsel %vm735_vm11, %v732_v20, %v2716_v36  ;;  %v4021_v36 = vld [vmem:[%s4367_s25] sm:$0xff] }
 0x3e7   :  { %3012 = vmatprep.subr.mxu0 %v3496_v3 }
 0x3e8   :  { %3013 = vmatpush3.msra.mxu0 %v3745_v26 }
 0x3e9   :  { %3014 = vmatprep.subr.mxu0 %v3496_v3 }
 0x3ea   :  { %3015 = vmatpush3.msra.mxu0 %v3750_v27 }
 0x3eb   :  { %3016 = vmatprep.subr.mxu0 %v3496_v3 }
 0x3ec   :  { %3017 = vmatpush3.msra.mxu0 %v3755_v28 }
 0x3ed   :  { %3018 = vmatprep.subr.mxu0 %v3496_v3 }
 0x3ee   :  { %3019 = vmatpush3.msra.mxu0 %v3760_v29 }
 0x3ef   :  { %3021 = vmatmul.mubr.msk.f32.vlgmr.msra.gmra.mxu0 %vm328_vm4, %v739_v37  ;;  %3038 = vmatprep.subr.mxu0 %v3496_v3  ;;  %v4027_v37 = vld [vmem:[%s4367_s25 + $0x10] sm:$0xff] }
 0x3f0   :  { %3039 = vmatpush3.msra.mxu0 %v3811_v52  ;;  %3048 = vmatprep.mubr.msk.f32.mxu0 %vm3497_vm0, %v3496_v3 }
 0x3f1   :  { %3040 = vmatprep.subr.mxu0 %v3496_v3 }
 0x3f2   :  { %3041 = vmatpush3.msra.mxu0 %v3816_v53 }
 0x3f3   :  { %3042 = vmatprep.subr.mxu0 %v3496_v3 }
 0x3f4   :  { %3043 = vmatpush3.msra.mxu0 %v3821_v54 }
 0x3f5   :  { %3044 = vmatprep.subr.mxu0 %v3496_v3 }
 0x3f6   :  { %3045 = vmatpush3.msra.mxu0 %v3826_v55 }
 0x3f7   :  { %3046 = vmatprep.subr.mxu0 %v3496_v3 }
 0x3f8   :  { %3047 = vmatpush3.msra.mxu0 %v3831_v56 }
 0x3f9   :  { %3062 = vmatprep.subr.mxu0 %v3496_v3 }
 0x49f   :  { %v652_v46 = vpop.f32.mrf.mxu0 }
 0x4a0   :  { %v653_v47 = vadd.f32 %v3926_v45, %v652_v46  ;;  %v4030_v46 = vld [vmem:[%s4367_s25 + $0x18] sm:$0xff] }
 0x4a1   :  { %v2992_v48 = vpop.f32.mrf.mxu0 }
 0x4a2   :  { %656 = vst [vmem:[#allocation2] sm:$0x3] %v653_v47  ;;  %v4033_v47 = vld [vmem:[%s4368_s8] sm:$0xff]  ;;  %v4036_v48 = vld [vmem:[%s4368_s8 + $0x8] sm:$0xff] }
 0x4af   :  { %v809_v49 = vpop.f32.mrf.mxu0 }
 0x4b0   :  { %v810_v50 = vadd.f32 %v3804_v44, %v809_v49  ;;  %v4039_v49 = vld [vmem:[%s4368_s8 + $0x10] sm:$0xff] }
 0x4b1   :  { %v3022_v51 = vpop.f32.mrf.mxu0 }
 0x4b2   :  { %v814_v58 = vmul.f32 1.442695, %v810_v50  ;;  %vm813_vm12 = vcmp.gt.f32.partialorder %v810_v50, 0.0  ;;  %v4045_v51 = vld [vmem:[%s4369_s14] sm:$0xff] }
 0x4b4   :  { %3328 = vpow2.f32 %v814_v58  ;;  %v4048_v58 = vld [vmem:[%s4369_s14 + $0x8] sm:$0xff] }
 0x4c1   :  { %v3329_v59 = vpop.eup %3328 }
 0x4c2   :  { %v2718_v60 = vadd.f32 -1.0, %v3329_v59  ;;  %v4051_v59 = vld [vmem:[%s4369_s14 + $0x10] sm:$0xff] }
 0x4c4   :  { %v817_v61 = vsel %vm813_vm12, %v810_v50, %v2718_v60  ;;  %v4042_v50 = vld [vmem:[%s4368_s8 + $0x18] sm:$0xff] }
 0x4c5   :  { %3036 = vmatmul.mubr.msk.f32.vlgmr.msra.gmra.mxu1 %vm413_vm6, %v817_v61  ;;  %v4054_v60 = vld [vmem:[%s4369_s14 + $0x18] sm:$0xff]  ;;  %v4057_v61 = vld [vmem:[%s4370_s19] ss:$0 sm:$0xff] }
 0x4c6   :  { %3052 = vmatpush3.msra.mxu1 %v3869_v9  ;;  %3059 = vmatprep.mubr.msk.f32.mxu1 %vm3497_vm0, %v3496_v3 }
 0x4c7   :  { %3053 = vmatprep.subr.mxu1 %v3496_v3 }
 0x4c8   :  { %3054 = vmatpush3.msra.mxu1 %v3874_v10 }
 0x4c9   :  { %3055 = vmatprep.subr.mxu1 %v3496_v3 }
 0x4ca   :  { %3056 = vmatpush3.msra.mxu1 %v3879_v11 }
 0x4cb   :  { %3057 = vmatprep.subr.mxu1 %v3496_v3 }
 0x4cc   :  { %3058 = vmatpush3.msra.mxu1 %v3884_v12 }
 0x4cd   :  { %3073 = vmatprep.subr.mxu1 %v3496_v3 }
 0x585   :  { %v887_v62 = vpop.f32.mrf.mxu1 }
 0x586   :  { %v888_v63 = vadd.f32 %v3836_v57, %v887_v62  ;;  %v4060_v62 = vld [vmem:[%s4371_s24] ss:$0 sm:$0xff] }
 0x587   :  { %v3037_v0 = vpop.f32.mrf.mxu1 }
 0x588   :  { %v892_v5 = vmul.f32 1.442695, %v888_v63  ;;  %vm891_vm13 = vcmp.gt.f32.partialorder %v888_v63, 0.0  ;;  %v4066_v0 = vld [vmem:[%s4373_s6] sm:$0xff] }
 0x58a   :  { %3330 = vpow2.f32 %v892_v5  ;;  %v4069_v5 = vld [vmem:[%s4373_s6 + $0x8] sm:$0xff] }
 0x597   :  { %v3331_v6 = vpop.eup %3330 }
 0x598   :  { %v2720_v7 = vadd.f32 -1.0, %v3331_v6  ;;  %v4072_v6 = vld [vmem:[%s4373_s6 + $0x10] sm:$0xff] }
 0x59a   :  { %v895_v14 = vsel %vm891_vm13, %v888_v63, %v2720_v7  ;;  %v4063_v63 = vld [vmem:[%s4372_s30] ss:$0 sm:$0xff]  ;;  %v4075_v7 = vld [vmem:[%s4373_s6 + $0x18] sm:$0xff] }
 0x59b   :  { %3049 = vmatmul.mubr.msk.f32.vlgmr.msra.gmra.mxu0 %vm498_vm8, %v895_v14  ;;  %v4081_v14 = vld [vmem:[%s4373_s6 + $0x28] sm:$0xff] }
 0x59c   :  { %3063 = vmatpush3.msra.mxu0 %v3682_v1  ;;  %3070 = vmatprep.mubr.msk.f32.mxu0 %vm3497_vm0, %v3496_v3 }
 0x59d   :  { %3064 = vmatprep.subr.mxu0 %v3496_v3 }
 0x59e   :  { %3065 = vmatpush3.msra.mxu0 %v3685_v2 }
 0x59f   :  { %3066 = vmatprep.subr.mxu0 %v3496_v3 }
 0x5a0   :  { %3067 = vmatpush3.msra.mxu0 %v3690_v4 }
 0x5a1   :  { %3068 = vmatprep.subr.mxu0 %v3496_v3 }
 0x5a2   :  { %3069 = vmatpush3.msra.mxu0 %v3710_v16 }
 0x5a3   :  { %3071 = vmatmul.mubr.msk.f32.vlgmr.msra.gmra.mxu0 %vm244_vm3, %v1054_v18  ;;  %3092 = vmatprep.subr.mxu0 %v3496_v3  ;;  %v4090_v18 = vld [vmem:[%s4373_s6 + $0x40] sm:$0xff] }
 0x5a4   :  { %3093 = vmatpush3.msra.mxu0 %v3774_v38  ;;  %3104 = vmatprep.mubr.msk.f32.mxu0 %vm3497_vm0, %v3496_v3 }
 0x5a5   :  { %3094 = vmatprep.subr.mxu0 %v3496_v3 }
 0x5a6   :  { %3095 = vmatpush3.msra.mxu0 %v3779_v39 }
 0x5a7   :  { %3096 = vmatprep.subr.mxu0 %v3496_v3 }
 0x5a8   :  { %3097 = vmatpush3.msra.mxu0 %v3784_v40 }
 0x5a9   :  { %3098 = vmatprep.subr.mxu0 %v3496_v3 }
 0x5aa   :  { %3099 = vmatpush3.msra.mxu0 %v3789_v41 }
 0x5ab   :  { %3100 = vmatprep.subr.mxu0 %v3496_v3 }
 0x5ac   :  { %3101 = vmatpush3.msra.mxu0 %v3794_v42 }
 0x5ad   :  { %3102 = vmatprep.subr.mxu0 %v3496_v3 }
 0x5ae   :  { %3103 = vmatpush3.msra.mxu0 %v3799_v43 }
 0x5af   :  { %3120 = vmatprep.subr.mxu0 %v3496_v3 }
 0x65b   :  { %v965_v1 = vpop.f32.mrf.mxu0 }
 0x65c   :  { %v966_v2 = vadd.f32 %v3889_v13, %v965_v1  ;;  %v4093_v1 = vld [vmem:[%s4373_s6 + $0x48] sm:$0xff] }
 0x65d   :  { %v3050_v4 = vpop.f32.mrf.mxu0 }
 0x65e   :  { %v970_v16 = vmul.f32 1.442695, %v966_v2  ;;  %vm969_vm14 = vcmp.gt.f32.partialorder %v966_v2, 0.0  ;;  %v4099_v4 = vld [vmem:[%s4374_s1] ss:$0 sm:$0xff] }
 0x660   :  { %3332 = vpow2.f32 %v970_v16  ;;  %v4102_v16 = vld [vmem:[%s4375_s28] sm:$0xff] }
 0x663   :  { %v1123_v38 = vpop.f32.mrf.mxu0 }
 0x664   :  { %v1124_v39 = vadd.f32 %v3767_v30, %v1123_v38  ;;  %v4105_v38 = vld [vmem:[%s4375_s28 + $0x8] sm:$0xff] }
 0x665   :  { %v3072_v40 = vpop.f32.mrf.mxu0 }
 0x666   :  { %v1128_v41 = vmul.f32 1.442695, %v1124_v39  ;;  %vm1127_vm15 = vcmp.gt.f32.partialorder %v1124_v39, 0.0  ;;  %v4111_v40 = vld [vmem:[%s4375_s28 + $0x18] sm:$0xff] }
 0x668   :  { %3334 = vpow2.f32 %v1128_v41  ;;  %v4114_v41 = vld [vmem:[%s4375_s28 + $0x20] sm:$0xff] }
 0x66d   :  { %v3333_v19 = vpop.eup %3332 }
 0x66e   :  { %v2722_v42 = vadd.f32 -1.0, %v3333_v19  ;;  %v4117_v19 = vld [vmem:[%s4376_s2] ss:$0 sm:$0xff] }
 0x670   :  { %v973_v20 = vsel %vm969_vm14, %v966_v2, %v2722_v42  ;;  %v4096_v2 = vld [vmem:[%s4373_s6 + $0x50] sm:$0xf] }
 0x671   :  { %3060 = vmatmul.mubr.msk.f32.vlgmr.msra.gmra.mxu1 %vm244_vm3, %v973_v20 }
 0x672   :  { %3074 = vmatpush3.msra.mxu1 %v3727_v22  ;;  %3089 = vmatprep.mubr.msk.f32.mxu1 %vm3497_vm0, %v3496_v3 }
 0x673   :  { %3075 = vmatprep.subr.mxu1 %v3496_v3 }
 0x674   :  { %3076 = vmatpush3.msra.mxu1 %v3730_v23 }
 0x675   :  { %3077 = vmatprep.subr.mxu1 %v3496_v3  ;;  %v3335_v30 = vpop.eup %3334 }
 0x676   :  { %3078 = vmatpush3.msra.mxu1 %v3735_v24  ;;  %v2725_v22 = vadd.f32 -1.0, %v3335_v30 }
 0x677   :  { %3079 = vmatprep.subr.mxu1 %v3496_v3 }
 0x678   :  { %3080 = vmatpush3.msra.mxu1 %v3740_v25  ;;  %v1131_v23 = vsel %vm1127_vm15, %v1124_v39, %v2725_v22  ;;  %v4108_v39 = vld [vmem:[%s4375_s28 + $0x10] sm:$0xff] }
 0x679   :  { %3081 = vmatprep.subr.mxu1 %v3496_v3 }
 0x67a   :  { %3082 = vmatpush3.msra.mxu1 %v3745_v26 }
 0x67b   :  { %3083 = vmatprep.subr.mxu1 %v3496_v3 }
 0x67c   :  { %3084 = vmatpush3.msra.mxu1 %v3750_v27 }
 0x67d   :  { %3085 = vmatprep.subr.mxu1 %v3496_v3 }
 0x67e   :  { %3086 = vmatpush3.msra.mxu1 %v3755_v28 }
 0x67f   :  { %3087 = vmatprep.subr.mxu1 %v3496_v3 }
 0x680   :  { %3088 = vmatpush3.msra.mxu1 %v3760_v29 }
 0x681   :  { %3090 = vmatmul.mubr.msk.f32.vlgmr.msra.gmra.mxu1 %vm328_vm4, %v1131_v23  ;;  %3107 = vmatprep.subr.mxu1 %v3496_v3 }
 0x682   :  { %3108 = vmatpush3.msra.mxu1 %v3811_v52  ;;  %3117 = vmatprep.mubr.msk.f32.mxu1 %vm3497_vm0, %v3496_v3 }
 0x683   :  { %3109 = vmatprep.subr.mxu1 %v3496_v3 }
 0x684   :  { %3110 = vmatpush3.msra.mxu1 %v3816_v53 }
 0x685   :  { %3111 = vmatprep.subr.mxu1 %v3496_v3 }
 0x686   :  { %3112 = vmatpush3.msra.mxu1 %v3821_v54 }
 0x687   :  { %3113 = vmatprep.subr.mxu1 %v3496_v3 }
 0x688   :  { %3114 = vmatpush3.msra.mxu1 %v3826_v55 }
 0x689   :  { %3115 = vmatprep.subr.mxu1 %v3496_v3 }
 0x68a   :  { %3116 = vmatpush3.msra.mxu1 %v3831_v56 }
 0x731   :  { %v1043_v24 = vpop.f32.mrf.mxu1 }
 0x732   :  { %v1044_v25 = vadd.f32 %v3926_v45, %v1043_v24 }
 0x733   :  { %v3061_v26 = vpop.f32.mrf.mxu1 }
 0x734   :  { %1048 = vst [vmem:[#allocation2 + $0x2] sm:$0x3] %v1044_v25 }
 0x741   :  { %v1201_v27 = vpop.f32.mrf.mxu1 }
 0x742   :  { %v1202_v28 = vadd.f32 %v3804_v44, %v1201_v27 }
 0x743   :  { %v3091_v29 = vpop.f32.mrf.mxu1 }
 0x744   :  { %v1206_v43 = vmul.f32 1.442695, %v1202_v28  ;;  %vm1205_vm1 = vcmp.gt.f32.partialorder %v1202_v28, 0.0 }
 0x746   :  { %3336 = vpow2.f32 %v1206_v43 }
 0x753   :  { %v3337_v52 = vpop.eup %3336 }
 0x754   :  { %v2727_v53 = vadd.f32 -1.0, %v3337_v52 }
 0x756   :  { %v1209_v54 = vsel %vm1205_vm1, %v1202_v28, %v2727_v53 }
 0x757   :  { %3105 = vmatmul.mubr.msk.f32.vlgmr.msra.gmra.mxu0 %vm413_vm6, %v1209_v54 }
 0x758   :  { %3121 = vmatpush3.msra.mxu0 %v3869_v9  ;;  %3128 = vmatprep.mubr.msk.f32.mxu0 %vm3497_vm0, %v3496_v3 }
 0x759   :  { %3122 = vmatprep.subr.mxu0 %v3496_v3 }
 0x75a   :  { %3123 = vmatpush3.msra.mxu0 %v3874_v10 }
 0x75b   :  { %3124 = vmatprep.subr.mxu0 %v3496_v3 }
 0x75c   :  { %3125 = vmatpush3.msra.mxu0 %v3879_v11 }
 0x75d   :  { %3126 = vmatprep.subr.mxu0 %v3496_v3 }
 0x75e   :  { %3127 = vmatpush3.msra.mxu0 %v3884_v12 }
 0x817   :  { %v1279_v44 = vpop.f32.mrf.mxu0 }
 0x818   :  { %v1280_v55 = vadd.f32 %v3836_v57, %v1279_v44 }
 0x819   :  { %v3106_v56 = vpop.f32.mrf.mxu0 }
 0x81a   :  { %v1284_v9 = vmul.f32 1.442695, %v1280_v55  ;;  %vm1283_vm2 = vcmp.gt.f32.partialorder %v1280_v55, 0.0 }
 0x81c   :  { %3338 = vpow2.f32 %v1284_v9 }
 0x829   :  { %v3339_v21 = vpop.eup %3338 }
 0x82a   :  { %v2729_v31 = vadd.f32 -1.0, %v3339_v21 }
 0x82c   :  { %v1287_v10 = vsel %vm1283_vm2, %v1280_v55, %v2729_v31 }
 0x82d   :  { %3118 = vmatmul.mubr.msk.f32.vlgmr.msra.gmra.mxu1 %vm498_vm8, %v1287_v10 }
 0x8ed   :  { %v1357_v11 = vpop.f32.mrf.mxu1 }
 0x8ee   :  { %v1358_v12 = vadd.f32 %v3889_v13, %v1357_v11  ;;  %v4024_v13 = vld [vmem:[%s4367_s25 + $0x8] sm:$0xff] }
 0x8ef   :  { %v3119_v57 = vpop.f32.mrf.mxu1 }
 0x8f0   :  { %v1362_v32 = vmul.f32 1.442695, %v1358_v12  ;;  %vm1361_vm4 = vcmp.gt.f32.partialorder %v1358_v12, 0.0 }
 0x8f2   :  { %3340 = vpow2.f32 %v1362_v32 }
 0x8ff   :  { %v3341_v33 = vpop.eup %3340 }
 0x900   :  { %v2731_v34 = vadd.f32 -1.0, %v3341_v33 }
 0x902   :  { %v1365_v35 = vsel %vm1361_vm4, %v1358_v12, %v2731_v34 }
 0x903   :  { %3129 = vmatmul.mubr.msk.f32.vlgmr.msra.gmra.mxu0 %vm244_vm3, %v1365_v35 }
 0x9c3   :  { %v1435_v42 = vpop.f32.mrf.mxu0 }
 0x9c4   :  { %v1436_v20 = vadd.f32 %v3926_v45, %v1435_v42 }
 0x9c5   :  { %v3130_v30 = vpop.f32.mrf.mxu0 }
 0x9c6   :  { %1440 = vst [vmem:[#allocation2 + $0x4] sm:$0x3] %v1436_v20 }
 0x9c7 LB: > { %v3498_v22 = vmov 0.0   ;;  %vm3499_vm5 = vmmov 0   ;;  %s4170_s10 = sshll.u32 %s3456_s7, 1  ;;  %s3500_s16 = smov 64   ;;  %vm2119_vm11 = vcmask 1043456   ;;  %vm2115_vm12 = vcmask 162816   ;;  %s3456_s7 = sphi %s4120_s7, %s1517_s7  }
 0x9c8   : > { %3131 = vmatprep.subr.mxu0 %v3498_v22  ;;  %3139 = vmatprep.mubr.msk.f32.mxu0 %vm3499_vm5, %v3498_v22  ;;  %s1520_s11 = sld [smem:[#allocation7 + %s4170_s10]]  ;;  %s3501_s18 = smov 32   ;;  %vm2371_vm14 = vcmask 254976  }
 0x9c9   : > { %3132 = vmatpush3.msra.mxu0 %v4030_v46  ;;  %3142 = vmatprep.subr.mxu1 %v3498_v22  ;;  %s1743_s0 = sld [smem:[#allocation11 + %s4170_s10]]  ;;  %s1628_s26 = sadd.s32 1, %s4170_s10 }
 0x9ca   : > { %3133 = vmatprep.subr.mxu0 %v3498_v22  ;;  %3143 = vmatpush3.msra.mxu1 %v4030_v46  ;;  %s4187_s22 = sld [smem:[#allocation9 + %s3456_s7]]  ;;  %s3502_s19 = smov 96  }
 0x9cb   : > { %3134 = vmatpush3.msra.mxu0 %v4027_v37  ;;  %3144 = vmatprep.subr.mxu1 %v3498_v22  ;;  %s4191_s5 = sld [smem:[#allocation12 + %s3456_s7]]  ;;  %s2369_s2 = scalar_lea.vmem [#allocation4], %s4170_s10 }
 0x9cc   : > { %3135 = vmatprep.subr.mxu0 %v3498_v22  ;;  %3145 = vmatpush3.msra.mxu1 %v4027_v37  ;;  %s1629_s21 = sld [smem:[#allocation7 + %s1628_s26]] }
 0x9cd   : > { %3136 = vmatpush3.msra.mxu0 %v4024_v13  ;;  %3146 = vmatprep.subr.mxu1 %v3498_v22  ;;  %s1848_s3 = sld [smem:[#allocation11 + %s1628_s26]] }
 0x9ce   : > { %3137 = vmatprep.subr.mxu0 %v3498_v22  ;;  %3147 = vmatpush3.msra.mxu1 %v4024_v13  ;;  %s2736_s15 = sshll.u32 %s1520_s11, 1  ;;  %s1961_s6 = sld [smem:[#allocation14 + %s3456_s7]] }
 0x9cf   : > { %3138 = vmatpush3.msra.mxu0 %v4021_v36  ;;  %3148 = vmatprep.subr.mxu1 %v3498_v22  ;;  %s1522_s9 = scalar_lea.vmem [#allocation4], %s2736_s15  ;;  %s2741_s17 = sshll.u32 %s1743_s0, 1 }
 0x9d0   : > { %3140 = vmatmul.mubr.f32.vlgmr.msra.gmra.mxu0 %v3498_v22  ;;  %3153 = vmatprep.subr.mxu0 %v3498_v22  ;;  %v1523_v45 = vld [vmem:[%s1522_s9] sm:$0x3]  ;;  %s1745_s27 = scalar_lea.vmem [#allocation2], %s2741_s17  ;;  %p1622_p11 = scmp.gt.s32.totalorder %s4187_s22, 0 }
 0x9d1   : > { %3154 = vmatpush3.msra.mxu0 %v4042_v50  ;;  %3161 = vmatprep.mubr.msk.f32.mxu0 %vm3499_vm5, %v3498_v22  ;;  %v1746_v26 = vld [vmem:[%s1745_s27] sm:$0x3]  ;;  %p1842_p12 = scmp.gt.s32.totalorder %s4191_s5, 0  ;;  %p1733_p13 = scmp.gt.s32.totalorder %s4187_s22, 1 }
 0x9d2   : > { %3155 = vmatprep.subr.mxu0 %v3498_v22  ;;  %3149 = vmatpush3.msra.mxu1 %v4021_v36  ;;  %s1623_s13 = scalar_select %p1622_p11, 1, 0 }
 0x9d3   : > { %3156 = vmatpush3.msra.mxu0 %v4039_v49  ;;  %3150 = vmatprep.mubr.msk.f32.mxu1 %vm3499_vm5, %v3498_v22  ;;  %s1843_s23 = scalar_select %p1842_p12, 1, 0 }
 0x9d4   : > { %3157 = vmatprep.subr.mxu0 %v3498_v22  ;;  %3164 = vmatprep.subr.mxu1 %v3498_v22  ;;  %s2738_s29 = sshll.u32 %s1629_s21, 1  ;;  %s2743_s8 = sshll.u32 %s1848_s3, 1 }
 0x9d5   : > { %3158 = vmatpush3.msra.mxu0 %v4036_v48  ;;  %s1631_s25 = scalar_lea.vmem [#allocation4], %s2738_s29  ;;  %s1850_s14 = scalar_lea.vmem [#allocation2], %s2743_s8 }
 0x9d6   : > { %3159 = vmatprep.subr.mxu0 %v3498_v22  ;;  %s1734_s24 = scalar_select %p1733_p13, 1, 0 }
 0x9d7   : > { %3160 = vmatpush3.msra.mxu0 %v4033_v47  ;;  %p1952_p0 = scmp.gt.s32.totalorder %s4191_s5, 1  ;;  %s2746_s1 = sshll.u32 %s1961_s6, 1 }
 0x9d8   : > { %3162 = vmatmul.mubr.f32.vlgmr.msra.gmra.mxu0 %v3498_v22  ;;  %3175 = vmatprep.subr.mxu0 %v3498_v22  ;;  %s1963_s28 = scalar_lea.vmem [#allocation3], %s2746_s1  ;;  %s1517_s7 = sadd.s32 1, %s3456_s7  }
 0x9d9   : > { %3176 = vmatpush3.msra.mxu0 %v4087_v17  ;;  %3183 = vmatprep.mubr.msk.f32.mxu0 %vm3499_vm5, %v3498_v22  ;;  %s1953_s30 = scalar_select %p1952_p0, 1, 0 }
 0x9da   : > { %3177 = vmatprep.subr.mxu0 %v3498_v22  ;;  %p1514_p1 = scmp.ge.s32.totalorder %s1517_s7, 4  }
 0x9db   : > { %3178 = vmatpush3.msra.mxu0 %v4084_v15  ;;  %s4381_s11 = sld [smem:[#allocation31_spill]] (%p1514_p1)  ;;  %vm2642_vm1 = vcmask (%p1514_p1), 1024  }
 0x9dc   : > { %3179 = vmatprep.subr.mxu0 %v3498_v22  ;;  %s4382_s15 = sld [smem:[#allocation33_spill]] (%p1514_p1) }
 0x9dd   : > { %3180 = vmatpush3.msra.mxu0 %v4081_v14  ;;  %s4383_s7 = sld [smem:[#allocation32_spill]] (%p1514_p1) }
 0x9de   : > { %3181 = vmatprep.subr.mxu0 %v3498_v22 }
 0x9df   : > { %3182 = vmatpush3.msra.mxu0 %v4078_v8  ;;  %v2761_v8 = vld [vmem:[%s3661_s12] ss:$0 sm:$0xff] (%p1514_p1) }
 0x9e0   : > { %3197 = vmatprep.subr.mxu0 %v3498_v22 }
 0x9e1   :  { %v2374_v36 = vld [vmem:[%s4381_s11] sm:$0xff] (%p1514_p1) }
 0x9e2   :  { %v2467_v37 = vld [vmem:[%s4382_s15 + $0x20] sm:$0xff] (%p1514_p1)  ;;  %v2466_v46 = vld [vmem:[%s4382_s15 + $0x18] sm:$0xff] (%p1514_p1) }
 0xa90   : > { %v1593_v23 = vpop.f32.mrf.mxu0 }
 0xa91   : > { %v1597_v24 = vadd.f32 %v1593_v23, %v1523_v45  ;;  %v1624_v23 = vstv %s1623_s13 }
 0xa92   : > { %v3141_v25 = vpop.f32.mrf.mxu0  ;;  %vm4194_vm6 = vcmp.eq.s32.totalorder %v1624_v23, 1 }
 0xa93   : > { %3342 = vtanh.f32 %v1597_v24  ;;  %v2737_v53 = vmul.f32 -1.442695, %v1597_v24 }
 0xa98   : > { %v1813_v27 = vpop.f32.mrf.mxu0 }
 0xa99   : > { %v1817_v28 = vadd.f32 %v1813_v27, %v1746_v26 }
 0xa9a   : > { %v3163_v29 = vpop.f32.mrf.mxu0 }
 0xa9b   : > { %3344 = vtanh.f32 %v1817_v28  ;;  %v2742_v54 = vmul.f32 -1.442695, %v1817_v28  ;;  %v1844_v28 = vstv %s1843_s23 }
 0xa9c   : > { %3346 = vpow2.f32 %v2737_v53  ;;  %vm4204_vm7 = vcmp.eq.s32.totalorder %v1844_v28, 1 }
 0xa9d   : > { %3348 = vpow2.f32 %v2742_v54 }
 0xaa0   : > { %v3343_v43 = vpop.eup %3342 }
 0xaa1   : > { %1607 = vrot.lane.b32.xlu0 %v3343_v43, %s3500_s16 }
 0xaa8   : > { %v3345_v52 = vpop.eup %3344 }
 0xaa9   : > { %1827 = vrot.lane.b32.xlu0 %v3345_v52, %s3500_s16  ;;  %v3347_v44 = vpop.eup %3346  ;;  %v1964_v52 = vld [vmem:[%s1963_s28] sm:$0x3] }
 0xaaa   : > { %v1601_v55 = vadd.f32 1.0, %v3347_v44  ;;  %v3349_v56 = vpop.eup %3348 }
 0xaab   : > { %v1821_v9 = vadd.f32 1.0, %v3349_v56 }
 0xaac   : > { %3350 = vrcp.f32 %v1601_v55  ;;  %v1632_v55 = vld [vmem:[%s1631_s25] sm:$0x3] }
 0xaad   : > { %3352 = vrcp.f32 %v1821_v9 }
 0xab9   : > { %v3351_v21 = vpop.eup %3350 }
 0xaba   : > { %v3353_v11 = vpop.eup %3352  ;;  %v1605_v32 = vmul.f32 0.0, %v3351_v21 }
 0xabb   : > { %v1825_v35 = vmul.f32 0.0, %v3353_v11 }
 0xb13   : > { %v1608_v31 = vpop.permute.xlu0 %1607 }
 0xb14   : > { %v1610_v10 = vmul.f32 %v3351_v21, %v1608_v31  ;;  %v1851_v31 = vld [vmem:[%s1850_s14] sm:$0x3] }
 0xb16   : > { %1612 = vrot.lane.b32.xlu1 %v1610_v10, %s3501_s18 }
 0xb1b   : > { %v1828_v12 = vpop.permute.xlu0 %1827 }
 0xb1c   : > { %v1830_v57 = vmul.f32 %v3353_v11, %v1828_v12 }
 0xb1e   : > { %1832 = vrot.lane.b32.xlu1 %v1830_v57, %s3501_s18 }
 0xb88   : > { %v1613_v33 = vpop.permute.xlu1 %1612 }
 0xb89   : > { %v4178_v34 = vadd.f32 %v1613_v33, %v1605_v32 }
 0xb8b   : > { %3354 = vtanh.f32 %v4178_v34 }
 0xb90   : > { %v1833_v42 = vpop.permute.xlu1 %1832 }
 0xb91   : > { %v4181_v20 = vadd.f32 %v1833_v42, %v1825_v35 }
 0xb93   : > { %3356 = vtanh.f32 %v4181_v20 }
 0xb98   : > { %v3355_v30 = vpop.eup %3354 }
 0xb99   : > { %1618 = vrot.lane.b32.xlu0 %v3355_v30, %s3500_s16 }
 0xba0   : > { %v3357_v45 = vpop.eup %3356 }
 0xba1   : > { %1838 = vrot.lane.b32.xlu1 %v3357_v45, %s3500_s16 }
 0xc0b   : > { %v1619_v24 = vpop.permute.xlu0 %1618 }
 0xc0c   : > { %v1621_v25 = vmul.f32 %v3351_v21, %v1619_v24 }
 0xc0e   : > { %v4200_v27 = vsel %vm4194_vm6, %v1621_v25, 0.0 }
 0xc0f   : > { %1634 = vrot.lane.b32.xlu0 %v4200_v27, %s3501_s18 }
 0xc13   : > { %v1839_v29 = vpop.permute.xlu1 %1838 }
 0xc14   : > { %v1841_v43 = vmul.f32 %v3353_v11, %v1839_v29 }
 0xc16   : > { %v4210_v53 = vsel %vm4204_vm7, %v1841_v43, 0.0 }
 0xc17   : > { %1853 = vrot.lane.b32.xlu1 %v4210_v53, %s3501_s18 }
 0xc81   : > { %v1635_v54 = vpop.permute.xlu0 %1634 }
 0xc82   : > { %3151 = vmatmul.mubr.msk.f32.vlgmr.msra.gmra.mxu1 %vm244_vm3, %v1635_v54 }
 0xc83   : > { %3165 = vmatpush3.msra.mxu1 %v4042_v50  ;;  %3172 = vmatprep.mubr.msk.f32.mxu1 %vm3499_vm5, %v3498_v22  ;;  %v2758_v50 = vld [vmem:[%s4383_s7] ss:$0 sm:$0xff] (%p1514_p1) }
 0xc84   : > { %3166 = vmatprep.subr.mxu1 %v3498_v22 }
 0xc85   : > { %3167 = vmatpush3.msra.mxu1 %v4039_v49  ;;  %v2463_v49 = vld [vmem:[%s4382_s15] sm:$0xff] (%p1514_p1) }
 0xc86   : > { %3168 = vmatprep.subr.mxu1 %v3498_v22 }
 0xc87   : > { %3169 = vmatpush3.msra.mxu1 %v4036_v48  ;;  %v2464_v48 = vld [vmem:[%s4382_s15 + $0x8] sm:$0xff] (%p1514_p1) }
 0xc88   : > { %3170 = vmatprep.subr.mxu1 %v3498_v22 }
 0xc89   : > { %v1854_v44 = vpop.permute.xlu1 %1853  ;;  %3171 = vmatpush3.msra.mxu1 %v4033_v47  ;;  %v2465_v47 = vld [vmem:[%s4382_s15 + $0x10] sm:$0xff] (%p1514_p1) }
 0xc8a   : > { %3173 = vmatmul.mubr.msk.f32.vlgmr.msra.gmra.mxu1 %vm244_vm3, %v1854_v44  ;;  %3186 = vmatprep.subr.mxu1 %v3498_v22  ;;  %v1627_v44 = vsel %vm4194_vm6, %v4178_v34, 0.0 }
 0xc8b   : > { %3187 = vmatpush3.msra.mxu1 %v4075_v7  ;;  %3194 = vmatprep.mubr.msk.f32.mxu1 %vm3499_vm5, %v3498_v22  ;;  %v2553_v7 = vld [vmem:[%s3666_s20] sm:$0xff] (%p1514_p1) }
 0xc8c   : > { %3188 = vmatprep.subr.mxu1 %v3498_v22 }
 0xc8d   : > { %3189 = vmatpush3.msra.mxu1 %v4072_v6  ;;  %v2554_v6 = vld [vmem:[%s3666_s20 + $0x8] sm:$0xff] (%p1514_p1) }
 0xc8e   : > { %3190 = vmatprep.subr.mxu1 %v3498_v22 }
 0xc8f   : > { %3191 = vmatpush3.msra.mxu1 %v4069_v5  ;;  %v2555_v5 = vld [vmem:[%s3666_s20 + $0x10] sm:$0xff] (%p1514_p1) }
 0xc90   : > { %3192 = vmatprep.subr.mxu1 %v3498_v22 }
 0xc91   : > { %3193 = vmatpush3.msra.mxu1 %v4066_v0  ;;  %v2556_v0 = vld [vmem:[%s3666_s20 + $0x18] sm:$0xff] (%p1514_p1) }
 0xc92   : > { %3206 = vmatprep.subr.mxu1 %v3498_v22 }
 0xd42   : > { %v1704_v56 = vpop.f32.mrf.mxu1 }
 0xd43   : > { %v1708_v9 = vadd.f32 %v1704_v56, %v1632_v55 }
 0xd44   : > { %v3152_v21 = vpop.f32.mrf.mxu1 }
 0xd45   : > { %3358 = vtanh.f32 %v1708_v9  ;;  %v2740_v33 = vmul.f32 -1.442695, %v1708_v9  ;;  %v1847_v21 = vsel %vm4204_vm7, %v4181_v20, 0.0 }
 0xd4a   : > { %v1923_v10 = vpop.f32.mrf.mxu1 }
 0xd4b   : > { %v1927_v11 = vadd.f32 %v1923_v10, %v1851_v31 }
 0xd4c   : > { %v3174_v12 = vpop.f32.mrf.mxu1 }
 0xd4d   : > { %3360 = vtanh.f32 %v1927_v11  ;;  %v2745_v35 = vmul.f32 -1.442695, %v1927_v11 }
 0xd4e   : > { %3362 = vpow2.f32 %v2740_v33 }
 0xd4f   : > { %3364 = vpow2.f32 %v2745_v35 }
 0xd52   : > { %v3359_v57 = vpop.eup %3358 }
 0xd53   : > { %1718 = vrot.lane.b32.xlu1 %v3359_v57, %s3500_s16  ;;  %v1735_v57 = vstv %s1734_s24 }
 0xd54   : > { %vm1736_vm9 = vcmp.eq.s32.totalorder %v1735_v57, 1 }
 0xd5a   : > { %v3361_v32 = vpop.eup %3360 }
 0xd5b   : > { %1937 = vrot.lane.b32.xlu0 %v3361_v32, %s3500_s16  ;;  %v3363_v42 = vpop.eup %3362 }
 0xd5c   : > { %v1712_v30 = vadd.f32 1.0, %v3363_v42  ;;  %v3365_v45 = vpop.eup %3364 }
 0xd5d   : > { %v1931_v23 = vadd.f32 1.0, %v3365_v45 }
 0xd5e   : > { %3366 = vrcp.f32 %v1712_v30  ;;  %v1954_v30 = vstv %s1953_s30 }
 0xd5f   : > { %3368 = vrcp.f32 %v1931_v23  ;;  %vm1955_vm10 = vcmp.eq.s32.totalorder %v1954_v30, 1 }
 0xd6b   : > { %v3367_v24 = vpop.eup %3366 }
 0xd6c   : > { %v3369_v29 = vpop.eup %3368  ;;  %v1716_v55 = vmul.f32 %v3367_v24, %v1627_v44 }
 0xd6d   : > { %v1935_v31 = vmul.f32 %v3369_v29, %v1847_v21 }
 0xdc5   : > { %v1719_v25 = vpop.permute.xlu1 %1718 }
 0xdc6   : > { %v1721_v28 = vmul.f32 %v3367_v24, %v1719_v25 }
 0xdc8   : > { %1723 = vrot.lane.b32.xlu1 %v1721_v28, %s3501_s18 }
 0xdcd   : > { %v1938_v43 = vpop.permute.xlu0 %1937 }
 0xdce   : > { %v1940_v54 = vmul.f32 %v3369_v29, %v1938_v43 }
 0xdd0   : > { %1942 = vrot.lane.b32.xlu0 %v1940_v54, %s3501_s18 }
 0xe3a   : > { %v1724_v56 = vpop.permute.xlu1 %1723 }
 0xe3b   : > { %v1726_v9 = vadd.f32 %v1724_v56, %v1716_v55 }
 0xe3d   : > { %3370 = vtanh.f32 %v1726_v9 }
 0xe42   : > { %v1943_v10 = vpop.permute.xlu0 %1942 }
 0xe43   : > { %v1945_v11 = vadd.f32 %v1943_v10, %v1935_v31 }
 0xe45   : > { %3372 = vtanh.f32 %v1945_v11 }
 0xe4a   : > { %v3371_v12 = vpop.eup %3370 }
 0xe4b   : > { %1729 = vrot.lane.b32.xlu1 %v3371_v12, %s3500_s16 }
 0xe4f   : > { %1738 = vrot.lane.b32.xlu1 %v4060_v62, %s3502_s19 }
 0xe52   : > { %v3373_v34 = vpop.eup %3372 }
 0xe53   : > { %1948 = vrot.lane.b32.xlu0 %v3373_v34, %s3500_s16 }
 0xe57   : > { %1957 = vrot.lane.b32.xlu0 %v4063_v63, %s3502_s19 }
 0xebd   : > { %v1730_v20 = vpop.permute.xlu1 %1729 }
 0xebe   : > { %v1732_v32 = vmul.f32 %v3367_v24, %v1730_v20 }
 0xec0   : > { %v1737_v33 = vsel %vm1736_vm9, %v1732_v32, %v4200_v27 }
 0xec1   : > { %v1739_v35 = vpop.permute.xlu1 %1738 }
 0xec2   : > { %v1741_v42 = vsel %vm4194_vm6, %v1737_v33, %v1739_v35 }
 0xec3   : > { %2041 = vrot.lane.b32.xlu1 %v1741_v42, %s3501_s18 }
 0xec5   : > { %v1949_v45 = vpop.permute.xlu0 %1948 }
 0xec6   : > { %v1951_v23 = vmul.f32 %v3369_v29, %v1949_v45 }
 0xec8   : > { %v1956_v25 = vsel %vm1955_vm10, %v1951_v23, %v4210_v53  ;;  %v2377_v23 = vld [vmem:[%s4381_s11 + $0x18] sm:$0xff] (%p1514_p1) }
 0xec9   : > { %v1958_v28 = vpop.permute.xlu0 %1957 }
 0xeca   : > { %v1960_v43 = vsel %vm4204_vm7, %v1956_v25, %v1958_v28  ;;  %v2376_v25 = vld [vmem:[%s4381_s11 + $0x10] sm:$0xff] (%p1514_p1)  ;;  %v2375_v28 = vld [vmem:[%s4381_s11 + $0x8] sm:$0xff] (%p1514_p1) }
 0xecb   : > { %1966 = vrot.lane.b32.xlu0 %v1960_v43, %s3501_s18 }
 0xf35   : > { %v2042_v27 = vpop.permute.xlu1 %2041 }
 0xf36   : > { %3195 = vmatmul.mubr.msk.f32.vlgmr.msra.gmra.mxu1 %vm244_vm3, %v2042_v27 }
 0xf37   : > { %3207 = vmatpush3.msra.mxu1 %v4114_v41  ;;  %3216 = vmatprep.mubr.msk.f32.mxu1 %vm3499_vm5, %v3498_v22 }
 0xf38   : > { %3208 = vmatprep.subr.mxu1 %v3498_v22 }
 0xf39   : > { %3209 = vmatpush3.msra.mxu1 %v4111_v40 }
 0xf3a   : > { %3210 = vmatprep.subr.mxu1 %v3498_v22 }
 0xf3b   : > { %3211 = vmatpush3.msra.mxu1 %v4108_v39 }
 0xf3c   : > { %3212 = vmatprep.subr.mxu1 %v3498_v22 }
 0xf3d   : > { %v1967_v26 = vpop.permute.xlu0 %1966  ;;  %3213 = vmatpush3.msra.mxu1 %v4105_v38 }
 0xf3e   : > { %3184 = vmatmul.mubr.msk.f32.vlgmr.msra.gmra.mxu0 %vm244_vm3, %v1967_v26  ;;  %3214 = vmatprep.subr.mxu1 %v3498_v22 }
 0xf3f   : > { %3198 = vmatpush3.msk.msra.mxu0 %vm2119_vm11, %v4096_v2  ;;  %3203 = vmatprep.mubr.msk.f32.mxu0 %vm3499_vm5, %v3498_v22 }
 0xf40   : > { %3199 = vmatprep.subr.mxu0 %v3498_v22  ;;  %3215 = vmatpush3.msra.mxu1 %v4102_v16  ;;  %v2764_v16 = vld [vmem:[#allocation6] ss:$0 sm:$0xff] (%p1514_p1) }
 0xf41   : > { %3200 = vmatpush3.msra.mxu0 %v4093_v1  ;;  %3241 = vmatprep.subr.mxu1 (%p1514_p1), %v3496_v3 }
 0xf42   : > { %3201 = vmatprep.subr.mxu0 %v3498_v22 }
 0xf43   : > { %3202 = vmatpush3.msra.mxu0 %v4090_v18 }
 0xf44   : > { %3204 = vmatmul.mubr.msk.f32.vlgmr.msra.gmra.mxu0 %vm2115_vm12, %v1964_v52  ;;  %3219 = vmatprep.subr.mxu0 %v3498_v22 }
 0xf45   : > { %3220 = vmatpush3.msra.mxu0 %v4054_v60  ;;  %3227 = vmatprep.mubr.msk.f32.mxu0 %vm3499_vm5, %v3498_v22 }
 0xf46   : > { %3221 = vmatprep.subr.mxu0 %v3498_v22 }
 0xf47   : > { %3222 = vmatpush3.msra.mxu0 %v4051_v59 }
 0xf48   : > { %3223 = vmatprep.subr.mxu0 %v3498_v22 }
 0xf49   : > { %3224 = vmatpush3.msra.mxu0 %v4048_v58 }
 0xf4a   : > { %3225 = vmatprep.subr.mxu0 %v3498_v22 }
 0xf4b   : > { %3226 = vmatpush3.msra.mxu0 %v4045_v51 }
 0xf4c   :  { %3230 = vmatprep.subr.mxu0 (%p1514_p1), %v3496_v3 }
 0xff6   : > { %v2111_v53 = vpop.f32.mrf.mxu1 }
 0xff8   : > { %v3196_v24 = vpop.f32.mrf.mxu1 }
 0xffe   : > { %v2036_v29 = vpop.f32.mrf.mxu0 }
 0xfff   : > { %v2112_v44 = vadd.f32 %v2111_v53, %v2036_v29 }
0x1000   : > { %v3185_v54 = vpop.f32.mrf.mxu0 }
0x1004   : > { %v2189_v55 = vpop.f32.mrf.mxu0 }
0x1005   : > { %v2193_v56 = vadd.f32 %v2189_v55, %v2112_v44 }
0x1006   : > { %v3205_v9 = vpop.f32.mrf.mxu0 }
0x1007   : > { %v2200_v21 = vadd.f32 %v4099_v4, %v2193_v56 }
0x1009   : > { %v2202_v31 = vmul.f32 1.442695, %v2200_v21  ;;  %vm2201_vm13 = vcmp.gt.f32.partialorder %v2200_v21, 0.0 }
0x100b   : > { %3374 = vpow2.f32 %v2202_v31 }
0x1018   : > { %v3375_v10 = vpop.eup %3374 }
0x1019   : > { %v2752_v11 = vadd.f32 -1.0, %v3375_v10 }
0x101b   : > { %v2205_v12 = vsel %vm2201_vm13, %v2200_v21, %v2752_v11 }
0x101c   : > { %3217 = vmatmul.mubr.msk.f32.vlgmr.msra.gmra.mxu1 %vm498_vm8, %v2205_v12 }
0x101d   :  { %3251 = vmatprep.mubr.msk.f32.mxu1 (%p1514_p1), %vm3497_vm0, %v3496_v3  ;;  %3242 = vmatpush3.msra.mxu1 (%p1514_p1), %v2467_v37 }
0x101e   :  { %3243 = vmatprep.subr.mxu1 (%p1514_p1), %v3496_v3 }
0x101f   :  { %3244 = vmatpush3.msra.mxu1 (%p1514_p1), %v2466_v46 }
0x1020   :  { %3245 = vmatprep.subr.mxu1 (%p1514_p1), %v3496_v3 }
0x1021   :  { %3246 = vmatpush3.msra.mxu1 (%p1514_p1), %v2465_v47 }
0x1022   :  { %3247 = vmatprep.subr.mxu1 (%p1514_p1), %v3496_v3 }
0x1023   :  { %3248 = vmatpush3.msra.mxu1 (%p1514_p1), %v2464_v48 }
0x1024   :  { %3249 = vmatprep.subr.mxu1 (%p1514_p1), %v3496_v3 }
0x1025   :  { %3250 = vmatpush3.msra.mxu1 (%p1514_p1), %v2463_v49 }
0x10dc   : > { %v2281_v22 = vpop.f32.mrf.mxu1 }
0x10dd   : > { %v2282_v34 = vadd.f32 %v4117_v19, %v2281_v22 }
0x10de   : > { %v3218_v57 = vpop.f32.mrf.mxu1 }
0x10df   : > { %v2286_v20 = vmul.f32 1.442695, %v2282_v34  ;;  %vm2285_vm15 = vcmp.gt.f32.partialorder %v2282_v34, 0.0 }
0x10e1   : > { %3376 = vpow2.f32 %v2286_v20 }
0x10ee   : > { %v3377_v32 = vpop.eup %3376 }
0x10ef   : > { %v2755_v33 = vadd.f32 -1.0, %v3377_v32 }
0x10f1   : > { %v2289_v35 = vsel %vm2285_vm15, %v2282_v34, %v2755_v33 }
0x10f2   : > { %3228 = vmatmul.mubr.msk.f32.vlgmr.msra.gmra.mxu0 %vm244_vm3, %v2289_v35  ;;  %2372 = vst.msk [vmem:[#allocation5] sm:$0x3] %vm2371_vm14, %v2289_v35 }
0x10f3   :  { %3238 = vmatprep.mubr.msk.f32.mxu0 (%p1514_p1), %vm3497_vm0, %v3496_v3  ;;  %3231 = vmatpush3.msra.mxu0 (%p1514_p1), %v2377_v23 }
0x10f4   :  { %3232 = vmatprep.subr.mxu0 (%p1514_p1), %v3496_v3 }
0x10f5   :  { %3233 = vmatpush3.msra.mxu0 (%p1514_p1), %v2376_v25 }
0x10f6   :  { %3234 = vmatprep.subr.mxu0 (%p1514_p1), %v3496_v3 }
0x10f7   :  { %3235 = vmatpush3.msra.mxu0 (%p1514_p1), %v2375_v28 }
0x10f8   :  { %3236 = vmatprep.subr.mxu0 (%p1514_p1), %v3496_v3 }
0x10f9   :  { %v2373_v13 = vld [vmem:[#allocation5] sm:$0x3] (%p1514_p1)  ;;  %3237 = vmatpush3.msra.mxu0 (%p1514_p1), %v2374_v36 }
0x10fa   :  { %3239 = vmatmul.mubr.msk.f32.vlgmr.msra.gmra.mxu0 (%p1514_p1), %vm244_vm3, %v2373_v13  ;;  %3254 = vmatprep.subr.mxu0 (%p1514_p1), %v3496_v3 }
0x10fb   :  { %3262 = vmatprep.mubr.msk.f32.mxu0 (%p1514_p1), %vm3497_vm0, %v3496_v3  ;;  %3255 = vmatpush3.msra.mxu0 (%p1514_p1), %v2556_v0 }
0x10fc   :  { %3256 = vmatprep.subr.mxu0 (%p1514_p1), %v3496_v3 }
0x10fd   :  { %3257 = vmatpush3.msra.mxu0 (%p1514_p1), %v2555_v5 }
0x10fe   :  { %3258 = vmatprep.subr.mxu0 (%p1514_p1), %v3496_v3 }
0x10ff   :  { %3259 = vmatpush3.msra.mxu0 (%p1514_p1), %v2554_v6 }
0x1100   :  { %3260 = vmatprep.subr.mxu0 (%p1514_p1), %v3496_v3 }
0x1101   :  { %3261 = vmatpush3.msra.mxu0 (%p1514_p1), %v2553_v7 }
0x11b1   :  { %1516 = sbr.rel (!%p1514_p1) target bundleno = 2503 (0x9c7), region = 222 }
0x11b2   : > { %v2365_v42 = vpop.f32.mrf.mxu0 }
0x11b3   : > { %v2366_v30 = vadd.f32 %v4057_v61, %v2365_v42 }
0x11b4   : > { %v3229_v45 = vpop.f32.mrf.mxu0 }
0x11b5   : > { %2370 = vst [vmem:[%s2369_s2] sm:$0x3] %v2366_v30 }
0x11ba   :  { %v2454_v51 = vpop.f32.mrf.mxu0 }
0x11bb   :  { %v2455_v58 = vadd.f32 %v2758_v50, %v2454_v51 }
0x11bc   :  { %v3240_v59 = vpop.f32.mrf.mxu0 }
0x11bd   :  { %v2459_v60 = vmul.f32 1.442695, %v2455_v58  ;;  %vm2458_vm0 = vcmp.gt.f32.partialorder %v2455_v58, 0.0 }
0x11bf   :  { %3378 = vpow2.f32 %v2459_v60 }
0x11cc   :  { %v3379_v61 = vpop.eup %3378 }
0x11cd   :  { %v2760_v62 = vadd.f32 -1.0, %v3379_v61 }
0x11cf   :  { %v2462_v63 = vsel %vm2458_vm0, %v2455_v58, %v2760_v62 }
0x11d0   :  { %3252 = vmatmul.mubr.msk.f32.vlgmr.msra.gmra.mxu1 %vm498_vm8, %v2462_v63 }
0x1290   :  { %v2544_v14 = vpop.f32.mrf.mxu1 }
0x1291   :  { %v2545_v15 = vadd.f32 %v2761_v8, %v2544_v14 }
0x1292   :  { %v3253_v17 = vpop.f32.mrf.mxu1 }
0x1293   :  { %v2549_v18 = vmul.f32 1.442695, %v2545_v15  ;;  %vm2548_vm8 = vcmp.gt.f32.partialorder %v2545_v15, 0.0 }
0x1295   :  { %3380 = vpow2.f32 %v2549_v18 }
0x12a2   :  { %v3381_v1 = vpop.eup %3380 }
0x12a3   :  { %v2763_v2 = vadd.f32 -1.0, %v3381_v1 }
0x12a5   :  { %v2552_v4 = vsel %vm2548_vm8, %v2545_v15, %v2763_v2 }
0x12a6   :  { %3263 = vmatmul.mubr.msk.f32.vlgmr.msra.gmra.mxu0 %vm244_vm3, %v2552_v4 }
0x1366   :  { %v2633_v38 = vpop.f32.mrf.mxu0 }
0x1367   :  { %v2634_v39 = vadd.f32 %v2764_v16, %v2633_v38 }
0x1368   :  { %v3264_v40 = vpop.f32.mrf.mxu0 }
0x1369   :  { %v2638_v41 = vmul.f32 1.442695, %v2634_v39  ;;  %vm2637_vm2 = vcmp.gt.f32.partialorder %v2634_v39, 0.0 }
0x136b   :  { %3382 = vpow2.f32 %v2638_v41 }
0x1378   :  { %v3383_v3 = vpop.eup %3382 }
0x1379   :  { %v2766_v19 = vadd.f32 -1.0, %v3383_v3 }
0x137b   :  { %v2641_v43 = vsel %vm2637_vm2, %v2634_v39, %v2766_v19 }
0x137c   :  { %2643 = vst.msk [vmem:[%s3674_s4] sm:$0x3] %vm2642_vm1, %v2641_v43 }
0x137d   :  { %2648 = vsyncpa [#allocation8], 1 }
0x137e   :  { %2649 = vsyncpa [#allocation10], 1 }
0x137f   :  { %2650 = vsyncpa [#allocation13], 1 }

</bundles_post_ra>
